<compile_context>
chip_gen: v5e
topology: v5e:2x2
jax: 0.10.0
libtpu: 0.0.40
codegen_flags: <defaults>
</compile_context>

<pallas_src>
import jax
import jax.numpy as jnp
import numpy as np
from jax.experimental import pallas as pl
from jax.experimental.pallas import tpu as pltpu


# -----------------------------------------------------------------------------
# in-kernel helpers (lane-dense (rows, W*C) layout)
# -----------------------------------------------------------------------------
def _fill_padded_rows(pad_ref, val):
    """Write `val` (H, WC) into rows [1, H+1) of a (H+2, WC) scratch and zero
    the two border rows (SAME zero padding along H, no concatenate relayout)."""
    h, wc = val.shape
    z = jnp.zeros((1, wc), pad_ref.dtype)
    pad_ref[0:1] = z
    pad_ref[h + 1:h + 2] = z
    pad_ref[1:h + 1] = val.astype(pad_ref.dtype)


def _conv3x3_banded(pad_ref, b_ref, bias_ref, h):
    """3x3 SAME conv on the lane-dense view: three accumulating MXU matmuls
    against banded (WC, WC) weights; dx shift + W zero padding are baked into
    b_ref, the dy shift is a sublane row offset into the padded scratch."""
    acc = jnp.dot(pad_ref[0:h], b_ref[0], preferred_element_type=jnp.float32)
    acc = acc + jnp.dot(pad_ref[1:h + 1], b_ref[1],
                        preferred_element_type=jnp.float32)
    acc = acc + jnp.dot(pad_ref[2:h + 2], b_ref[2],
                        preferred_element_type=jnp.float32)
    return acc + bias_ref[...]                      # bias row is lane-dense f32


def _rcab_tail(h_bf, b1_ref, c1_ref, b2_ref, c2_ref,
               y_out, pool_out, hpad, t1pad):
    """conv1 -> ReLU -> conv2 (+biases) and the partial CA pool (row sums)."""
    hh = h_bf.shape[0]
    _fill_padded_rows(hpad, h_bf)
    a1 = jnp.maximum(_conv3x3_banded(hpad, b1_ref, c1_ref, hh), 0.0)
    _fill_padded_rows(t1pad, a1)                    # rounds to bf16 for conv2
    a2 = _conv3x3_banded(t1pad, b2_ref, c2_ref, hh)
    y_out[0] = a2.astype(y_out.dtype)
    # lane-dense partial pool (sum over H); the W-group reduce + 1/(H*W) and
    # the two CA FCs are hoisted to plain JAX in the wrapper.
    pool_out[0] = jnp.sum(a2, axis=0, keepdims=True)


# -----------------------------------------------------------------------------
# Kernel 1a: first RCAB (no previous CA apply to fuse)
# -----------------------------------------------------------------------------
def _rcab_first_kernel(x_ref, b1_ref, c1_ref, b2_ref, c2_ref,
                       y_out, pool_out, hpad, t1pad):
    _rcab_tail(x_ref[0], b1_ref, c1_ref, b2_ref, c2_ref,
               y_out, pool_out, hpad, t1pad)


# -----------------------------------------------------------------------------
# Kernel 1b: subsequent RCABs, fused with the PREVIOUS RCAB's CA apply:
#   h = x_prev + y_prev * scale_prev ; y = conv2(relu(conv1(h))) ; pool rows
# -----------------------------------------------------------------------------
def _rcab_fused_kernel(x_ref, yp_ref, s_ref, b1_ref, c1_ref, b2_ref, c2_ref,
                       h_out, y_out, pool_out, hpad, t1pad):
    h = (x_ref[0].astype(jnp.float32)
         + yp_ref[0].astype(jnp.float32) * s_ref[0])
    h_bf = h.astype(h_out.dtype)
    h_out[0] = h_bf
    _rcab_tail(h_bf, b1_ref, c1_ref, b2_ref, c2_ref,
               y_out, pool_out, hpad, t1pad)


# -----------------------------------------------------------------------------
# Kernel 2: final 3x3 group conv, fused with the LAST RCAB's CA apply and the
# outer residual add of the group.
# -----------------------------------------------------------------------------
def _group_conv_kernel(x_ref, yp_ref, s_ref, res_ref, bg_ref, cg_ref,
                       o_ref, hpad):
    h = (x_ref[0].astype(jnp.float32)
         + yp_ref[0].astype(jnp.float32) * s_ref[0])
    hh = h.shape[0]
    _fill_padded_rows(hpad, h.astype(hpad.dtype))
    acc = _conv3x3_banded(hpad, bg_ref, cg_ref, hh)
    o_ref[0] = (acc + res_ref[0].astype(jnp.float32)).astype(o_ref.dtype)


# -----------------------------------------------------------------------------
# pallas_call wrappers
# -----------------------------------------------------------------------------
def _act_spec(hh, wc):
    return pl.BlockSpec((1, hh, wc), lambda i: (i, 0, 0))


def _band_spec(wc):
    return pl.BlockSpec((3, wc, wc), lambda i: (0, 0, 0))


def _bias_spec(wc):
    return pl.BlockSpec((1, wc), lambda i: (0, 0))


def rcab_first(x2, b1, c1, b2, c2):
    n, hh, wc = x2.shape
    cost = pl.CostEstimate(
        flops=n * 12 * hh * wc * wc, transcendentals=0,
        bytes_accessed=2 * n * hh * wc * 2 + n * wc * 4
        + 2 * (3 * wc * wc * 2 + wc * 4))
    return pl.pallas_call(
        _rcab_first_kernel,
        out_shape=(jax.ShapeDtypeStruct((n, hh, wc), x2.dtype),
                   jax.ShapeDtypeStruct((n, 1, wc), jnp.float32)),
        grid_spec=pltpu.PrefetchScalarGridSpec(
            num_scalar_prefetch=0, grid=(n,),
            in_specs=[_act_spec(hh, wc),
                      _band_spec(wc), _bias_spec(wc),
                      _band_spec(wc), _bias_spec(wc)],
            out_specs=[_act_spec(hh, wc),
                       pl.BlockSpec((1, 1, wc), lambda i: (i, 0, 0))],
            scratch_shapes=[pltpu.VMEM((hh + 2, wc), x2.dtype),
                            pltpu.VMEM((hh + 2, wc), x2.dtype)]),
        compiler_params=pltpu.CompilerParams(
            dimension_semantics=("parallel",)),
        cost_estimate=cost,
    )(x2, b1, c1, b2, c2)


def rcab_fused(x_prev, y_prev, scale, b1, c1, b2, c2):
    n, hh, wc = x_prev.shape
    cost = pl.CostEstimate(
        flops=n * 12 * hh * wc * wc, transcendentals=0,
        bytes_accessed=4 * n * hh * wc * 2 + 2 * n * wc * 4
        + 2 * (3 * wc * wc * 2 + wc * 4))
    return pl.pallas_call(
        _rcab_fused_kernel,
        out_shape=(jax.ShapeDtypeStruct((n, hh, wc), x_prev.dtype),   # h
                   jax.ShapeDtypeStruct((n, hh, wc), x_prev.dtype),   # y
                   jax.ShapeDtypeStruct((n, 1, wc), jnp.float32)),    # pool rows
        grid_spec=pltpu.PrefetchScalarGridSpec(
            num_scalar_prefetch=0, grid=(n,),
            in_specs=[_act_spec(hh, wc),                     # x_prev
                      _act_spec(hh, wc),                     # y_prev (donated)
                      pl.BlockSpec((1, 1, wc), lambda i: (i, 0, 0)),
                      _band_spec(wc), _bias_spec(wc),
                      _band_spec(wc), _bias_spec(wc)],
            out_specs=[_act_spec(hh, wc),
                       _act_spec(hh, wc),
                       pl.BlockSpec((1, 1, wc), lambda i: (i, 0, 0))],
            scratch_shapes=[pltpu.VMEM((hh + 2, wc), x_prev.dtype),
                            pltpu.VMEM((hh + 2, wc), x_prev.dtype)]),
        compiler_params=pltpu.CompilerParams(
            dimension_semantics=("parallel",)),
        # y_prev is dead after the fused apply -> donate its HBM buffer to y.
        input_output_aliases={1: 1},
        cost_estimate=cost,
    )(x_prev, y_prev, scale, b1, c1, b2, c2)


def group_conv_residual(h_prev, y_prev, scale, x_res, bg, cg):
    n, hh, wc = h_prev.shape
    cost = pl.CostEstimate(
        flops=n * 6 * hh * wc * wc, transcendentals=0,
        bytes_accessed=3 * n * hh * wc * 2 + n * hh * wc * 4 + n * wc * 4
        + 3 * wc * wc * 2 + wc * 4)
    return pl.pallas_call(
        _group_conv_kernel,
        out_shape=jax.ShapeDtypeStruct((n, hh, wc), jnp.float32),
        grid_spec=pltpu.PrefetchScalarGridSpec(
            num_scalar_prefetch=0, grid=(n,),
            in_specs=[_act_spec(hh, wc),                     # h_prev
                      _act_spec(hh, wc),                     # y_prev
                      pl.BlockSpec((1, 1, wc), lambda i: (i, 0, 0)),
                      _act_spec(hh, wc),                     # group residual
                      _band_spec(wc), _bias_spec(wc)],
            out_specs=_act_spec(hh, wc),
            scratch_shapes=[pltpu.VMEM((hh + 2, wc), h_prev.dtype)]),
        compiler_params=pltpu.CompilerParams(
            dimension_semantics=("parallel",)),
        cost_estimate=cost,
    )(h_prev, y_prev, scale, x_res, bg, cg)


# -----------------------------------------------------------------------------
# Hoisted channel-attention FCs (few flops -> plain JAX, per review item)
# -----------------------------------------------------------------------------
def ca_scale(pool_rowsum, p, hh, ww):
    c = p["ca_b2"].shape[0]
    n = pool_rowsum.shape[0]
    pool = pool_rowsum.reshape(n, ww, c).sum(axis=1) * (1.0 / (hh * ww))  # (N,C)
    hid = jax.nn.relu(pool @ p["ca_w1"].astype(jnp.float32)
                      + p["ca_b1"].astype(jnp.float32))
    s = jax.nn.sigmoid(hid @ p["ca_w2"].astype(jnp.float32)
                       + p["ca_b2"].astype(jnp.float32))
    # pre-replicate to the lane-dense (N, 1, W*C) row used by the kernels
    return jnp.tile(s, (1, ww)).reshape(n, 1, ww * c)


# -----------------------------------------------------------------------------
# Module assembly (3 pallas_calls for num_rcab=2, plus tiny JAX glue)
# -----------------------------------------------------------------------------
def rg_forward(x2, kp):
    n, hh, wc = x2.shape
    c = kp["rcabs"][0]["ca_b2"].shape[0]
    ww = wc // c
    ps = kp["rcabs"]

    p0 = ps[0]
    y, prow = rcab_first(x2, p0["B1"], p0["c1"], p0["B2"], p0["c2"])
    scale = ca_scale(prow, p0, hh, ww)

    h = x2
    for p in ps[1:]:
        h, y, prow = rcab_fused(h, y, scale, p["B1"], p["c1"], p["B2"], p["c2"])
        scale = ca_scale(prow, p, hh, ww)

    return group_conv_residual(h, y, scale, x2, kp["Bg"], kp["cg"])


# -----------------------------------------------------------------------------
# Weight preprocessing: banded (W*C, W*C) conv matrices + lane-dense bias rows
# -----------------------------------------------------------------------------
def _banded_conv_weight(w_hwio, ww):
    """(3,3,Cin,Cout) HWIO -> (3, W*Cin, W*Cout) bf16 with the dx shift and the
    SAME zero padding along W baked in (entries are exact bf16 weight values)."""
    w = np.asarray(w_hwio.astype(jnp.float32))
    c = w.shape[-1]
    band = np.zeros((3, ww, c, ww, c), np.float32)
    for dy in range(3):
        for dx in range(3):
            for wo in range(ww):
                wi = wo + dx - 1
                if 0 <= wi < ww:
                    band[dy, wi, :, wo, :] = w[dy, dx]
    return jnp.asarray(band.reshape(3, ww * c, ww * c), dtype=jnp.bfloat16)


def _bias_row(b, ww):
    return jnp.tile(b.astype(jnp.float32), ww).reshape(1, -1)


def prepare_rg_params(params_bf, ww):
    kp = {"rcabs": []}
    for p in params_bf["rcabs"]:
        kp["rcabs"].append({
            "B1": _banded_conv_weight(p["w1"], ww), "c1": _bias_row(p["b1"], ww),
            "B2": _banded_conv_weight(p["w2"], ww), "c2": _bias_row(p["b2"], ww),
            "ca_w1": p["ca_w1"], "ca_b1": p["ca_b1"],
            "ca_w2": p["ca_w2"], "ca_b2": p["ca_b2"],
        })
    kp["Bg"] = _banded_conv_weight(params_bf["w_last"], ww)
    kp["cg"] = _bias_row(params_bf["b_last"], ww)
    return kp


# -----------------------------------------------------------------------------
# Deterministic parameter init (synthetic weights, no checkpoint)
# -----------------------------------------------------------------------------
def init_params(key, num_features, num_rcab, reduction):
    c, cr = num_features, num_features // reduction
    params = {"rcabs": []}
    keys = iter(jax.random.split(key, num_rcab * 6 + 2))

    def nrm(k, shape, scale):
        return scale * jax.random.normal(k, shape, jnp.float32)

    for _ in range(num_rcab):
        params["rcabs"].append({
            "w1": nrm(next(keys), (3, 3, c, c), 0.1),
            "b1": nrm(next(keys), (c,), 0.01),
            "w2": nrm(next(keys), (3, 3, c, c), 0.1),
            "b2": nrm(next(keys), (c,), 0.01),
            "ca_w1": nrm(next(keys), (c, cr), 0.1),
            "ca_b1": jnp.zeros((cr,), jnp.float32),
            "ca_w2": nrm(next(keys), (cr, c), 0.1),
            "ca_b2": jnp.zeros((c,), jnp.float32),
        })
    params["w_last"] = nrm(next(keys), (3, 3, c, c), 0.1)
    params["b_last"] = nrm(next(keys), (c,), 0.01)
    return params


# -----------------------------------------------------------------------------
# Pure-JAX f32 reference (mirrors the PyTorch forward) for a correctness check
# -----------------------------------------------------------------------------
def _conv3x3_ref(x, w, b):
    y = jax.lax.conv_general_dilated(
        x, w, (1, 1), "SAME",
        dimension_numbers=("NHWC", "HWIO", "NHWC"),
        precision=jax.lax.Precision.HIGHEST,
    )
    return y + b.reshape(1, 1, 1, -1)


def rg_ref(x, params):
    h = x
    for p in params["rcabs"]:
        t = jax.nn.relu(_conv3x3_ref(h, p["w1"], p["b1"]))
        t = _conv3x3_ref(t, p["w2"], p["b2"])
        pooled = jnp.mean(t, axis=(1, 2), keepdims=True)
        a = jax.nn.relu(jnp.einsum("nhwc,cd->nhwd", pooled, p["ca_w1"])
                        + p["ca_b1"])
        s = jax.nn.sigmoid(jnp.einsum("nhwc,cd->nhwd", a, p["ca_w2"])
                           + p["ca_b2"])
        h = h + t * s
    return x + _conv3x3_ref(h, params["w_last"], params["b_last"])


if __name__ == "__main__":
    # RG(num_features=8, num_rcab=2, reduction=4) on a small input.
    num_features, num_rcab, reduction = 8, 2, 4
    n, hh, ww = 2, 16, 16                    # W * C = 128 -> lane-dense layout

    key = jax.random.PRNGKey(0)
    kx, kp = jax.random.split(key)
    x_nchw = jax.random.normal(kx, (n, num_features, hh, ww), jnp.float32)
    x_nhwc = jnp.transpose(x_nchw, (0, 2, 3, 1))          # NCHW -> NHWC

    params = init_params(kp, num_features, num_rcab, reduction)

    # bf16 activations & weights feed the kernels; accumulation stays in f32.
    to_bf16 = lambda t: jax.tree_util.tree_map(
        lambda a: a.astype(jnp.bfloat16), t)
    to_f32 = lambda t: jax.tree_util.tree_map(
        lambda a: a.astype(jnp.float32), t)
    params_bf = to_bf16(params)
    x_bf = x_nhwc.astype(jnp.bfloat16)

    kparams = prepare_rg_params(params_bf, ww)            # one-time weight prep
    x2 = x_bf.reshape(n, hh, ww * num_features)           # lane-dense (N,H,W*C)

    fwd = jax.jit(rg_forward)
    out2 = jax.block_until_ready(fwd(x2, kparams))
    out = out2.reshape(n, hh, ww, num_features)

    # f32 reference on the SAME bf16-rounded weights/input, so only the
    # kernels' bf16 intermediate roundings differ.
    ref = rg_ref(x_bf.astype(jnp.float32), to_f32(params_bf))

    np.testing.assert_allclose(np.asarray(out, dtype=np.float32),
                               np.asarray(ref), rtol=4e-2, atol=4e-2)
    print("KERNEL_OK")
</pallas_src>

<mosaic_0001>
module attributes {stable_mosaic.version = 11 : i64} {
  func.func @_rcab_first_kernel(%arg0: i32, %arg1: memref<1x16x128xbf16, #tpu.memory_space<vmem>>, %arg2: memref<3x128x128xbf16, #tpu.memory_space<vmem>>, %arg3: memref<1x128xf32, #tpu.memory_space<vmem>>, %arg4: memref<3x128x128xbf16, #tpu.memory_space<vmem>>, %arg5: memref<1x128xf32, #tpu.memory_space<vmem>>, %arg6: memref<1x16x128xbf16, #tpu.memory_space<vmem>>, %arg7: memref<1x1x128xf32, #tpu.memory_space<vmem>>, %arg8: memref<18x128xbf16, #tpu.memory_space<vmem>>, %arg9: memref<18x128xbf16, #tpu.memory_space<vmem>>) attributes {dimension_semantics = [#tpu.dimension_semantics<parallel>], iteration_bounds = array<i64: 2>, scalar_prefetch = 0 : i64, scratch_operands = 2 : i64, tpu.core_type = #tpu.core_type<tc>, window_params = [{transform_indices = @transform_0, window_bounds = array<i64: 1, 16, 128>}, {pipeline_mode = #tpu.pipeline_mode<synchronous>, transform_indices = @transform_1, window_bounds = array<i64: 3, 128, 128>}, {pipeline_mode = #tpu.pipeline_mode<synchronous>, transform_indices = @transform_2, window_bounds = array<i64: 1, 128>}, {pipeline_mode = #tpu.pipeline_mode<synchronous>, transform_indices = @transform_3, window_bounds = array<i64: 3, 128, 128>}, {pipeline_mode = #tpu.pipeline_mode<synchronous>, transform_indices = @transform_4, window_bounds = array<i64: 1, 128>}, {transform_indices = @transform_5, window_bounds = array<i64: 1, 16, 128>}, {transform_indices = @transform_6, window_bounds = array<i64: 1, 1, 128>}]} {
    %c0 = arith.constant 0 : index
    %c0_0 = arith.constant 0 : index
    %c0_1 = arith.constant 0 : index
    %0 = vector.load %arg1[%c0, %c0_0, %c0_1] : memref<1x16x128xbf16, #tpu.memory_space<vmem>>, vector<1x16x128xbf16>
    %1 = vector.shape_cast %0 : vector<1x16x128xbf16> to vector<16x128xbf16>
    %cst = arith.constant 0.000000e+00 : bf16
    %2 = vector.broadcast %cst : bf16 to vector<1x128xbf16>
    %c0_2 = arith.constant 0 : index
    %c0_3 = arith.constant 0 : index
    %3 = vector.load %arg8[%c0_2, %c0_3] : memref<18x128xbf16, #tpu.memory_space<vmem>>, vector<1x128xbf16>
    tpu.vector_store %arg8[%c0_2, %c0_3], %2 {strides = array<i32>} : memref<18x128xbf16, #tpu.memory_space<vmem>>, vector<1x128xbf16>,
    %c17 = arith.constant 17 : index
    %c0_4 = arith.constant 0 : index
    %4 = vector.load %arg8[%c17, %c0_4] : memref<18x128xbf16, #tpu.memory_space<vmem>>, vector<1x128xbf16>
    tpu.vector_store %arg8[%c17, %c0_4], %2 {strides = array<i32>} : memref<18x128xbf16, #tpu.memory_space<vmem>>, vector<1x128xbf16>,
    %c1 = arith.constant 1 : index
    %c0_5 = arith.constant 0 : index
    %5 = vector.load %arg8[%c1, %c0_5] : memref<18x128xbf16, #tpu.memory_space<vmem>>, vector<16x128xbf16>
    tpu.vector_store %arg8[%c1, %c0_5], %1 {strides = array<i32>} : memref<18x128xbf16, #tpu.memory_space<vmem>>, vector<16x128xbf16>,
    %c0_6 = arith.constant 0 : index
    %c0_7 = arith.constant 0 : index
    %6 = vector.load %arg8[%c0_6, %c0_7] : memref<18x128xbf16, #tpu.memory_space<vmem>>, vector<16x128xbf16>
    %c0_8 = arith.constant 0 : index
    %c0_9 = arith.constant 0 : index
    %c0_10 = arith.constant 0 : index
    %7 = vector.load %arg2[%c0_8, %c0_9, %c0_10] : memref<3x128x128xbf16, #tpu.memory_space<vmem>>, vector<1x128x128xbf16>
    %8 = vector.shape_cast %7 : vector<1x128x128xbf16> to vector<128x128xbf16>
    %cst_11 = arith.constant dense<0.000000e+00> : vector<16x128xf32>
    %9 = tpu.matmul %6, %8, %cst_11 {dimension_numbers = #tpu.dot_dimension_numbers<[1], [0], [0], [1], [0, 0, 1, 1], [], []>} : vector<16x128xbf16>, vector<128x128xbf16>, vector<16x128xf32> -> vector<16x128xf32>
    %c1_12 = arith.constant 1 : index
    %c0_13 = arith.constant 0 : index
    %10 = vector.load %arg8[%c1_12, %c0_13] : memref<18x128xbf16, #tpu.memory_space<vmem>>, vector<16x128xbf16>
    %c1_14 = arith.constant 1 : index
    %c0_15 = arith.constant 0 : index
    %c0_16 = arith.constant 0 : index
    %11 = vector.load %arg2[%c1_14, %c0_15, %c0_16] : memref<3x128x128xbf16, #tpu.memory_space<vmem>>, vector<1x128x128xbf16>
    %12 = vector.shape_cast %11 : vector<1x128x128xbf16> to vector<128x128xbf16>
    %cst_17 = arith.constant dense<0.000000e+00> : vector<16x128xf32>
    %13 = tpu.matmul %10, %12, %cst_17 {dimension_numbers = #tpu.dot_dimension_numbers<[1], [0], [0], [1], [0, 0, 1, 1], [], []>} : vector<16x128xbf16>, vector<128x128xbf16>, vector<16x128xf32> -> vector<16x128xf32>
    %14 = arith.addf %9, %13 : vector<16x128xf32>
    %c2 = arith.constant 2 : index
    %c0_18 = arith.constant 0 : index
    %15 = vector.load %arg8[%c2, %c0_18] : memref<18x128xbf16, #tpu.memory_space<vmem>>, vector<16x128xbf16>
    %c2_19 = arith.constant 2 : index
    %c0_20 = arith.constant 0 : index
    %c0_21 = arith.constant 0 : index
    %16 = vector.load %arg2[%c2_19, %c0_20, %c0_21] : memref<3x128x128xbf16, #tpu.memory_space<vmem>>, vector<1x128x128xbf16>
    %17 = vector.shape_cast %16 : vector<1x128x128xbf16> to vector<128x128xbf16>
    %cst_22 = arith.constant dense<0.000000e+00> : vector<16x128xf32>
    %18 = tpu.matmul %15, %17, %cst_22 {dimension_numbers = #tpu.dot_dimension_numbers<[1], [0], [0], [1], [0, 0, 1, 1], [], []>} : vector<16x128xbf16>, vector<128x128xbf16>, vector<16x128xf32> -> vector<16x128xf32>
    %19 = arith.addf %14, %18 : vector<16x128xf32>
    %c0_23 = arith.constant 0 : index
    %c0_24 = arith.constant 0 : index
    %20 = vector.load %arg3[%c0_23, %c0_24] : memref<1x128xf32, #tpu.memory_space<vmem>>, vector<1x128xf32>
    %21 = vector.broadcast %20 : vector<1x128xf32> to vector<16x128xf32>
    %22 = arith.addf %19, %21 : vector<16x128xf32>
    %cst_25 = arith.constant 0.000000e+00 : f32
    %23 = vector.broadcast %cst_25 : f32 to vector<16x128xf32>
    %24 = arith.maximumf %22, %23 : vector<16x128xf32>
    %cst_26 = arith.constant 0.000000e+00 : bf16
    %25 = vector.broadcast %cst_26 : bf16 to vector<1x128xbf16>
    %c0_27 = arith.constant 0 : index
    %c0_28 = arith.constant 0 : index
    %26 = vector.load %arg9[%c0_27, %c0_28] : memref<18x128xbf16, #tpu.memory_space<vmem>>, vector<1x128xbf16>
    tpu.vector_store %arg9[%c0_27, %c0_28], %25 {strides = array<i32>} : memref<18x128xbf16, #tpu.memory_space<vmem>>, vector<1x128xbf16>,
    %c17_29 = arith.constant 17 : index
    %c0_30 = arith.constant 0 : index
    %27 = vector.load %arg9[%c17_29, %c0_30] : memref<18x128xbf16, #tpu.memory_space<vmem>>, vector<1x128xbf16>
    tpu.vector_store %arg9[%c17_29, %c0_30], %25 {strides = array<i32>} : memref<18x128xbf16, #tpu.memory_space<vmem>>, vector<1x128xbf16>,
    %28 = arith.truncf %24 : vector<16x128xf32> to vector<16x128xbf16>
    %c1_31 = arith.constant 1 : index
    %c0_32 = arith.constant 0 : index
    %29 = vector.load %arg9[%c1_31, %c0_32] : memref<18x128xbf16, #tpu.memory_space<vmem>>, vector<16x128xbf16>
    tpu.vector_store %arg9[%c1_31, %c0_32], %28 {strides = array<i32>} : memref<18x128xbf16, #tpu.memory_space<vmem>>, vector<16x128xbf16>,
    %c0_33 = arith.constant 0 : index
    %c0_34 = arith.constant 0 : index
    %30 = vector.load %arg9[%c0_33, %c0_34] : memref<18x128xbf16, #tpu.memory_space<vmem>>, vector<16x128xbf16>
    %c0_35 = arith.constant 0 : index
    %c0_36 = arith.constant 0 : index
    %c0_37 = arith.constant 0 : index
    %31 = vector.load %arg4[%c0_35, %c0_36, %c0_37] : memref<3x128x128xbf16, #tpu.memory_space<vmem>>, vector<1x128x128xbf16>
    %32 = vector.shape_cast %31 : vector<1x128x128xbf16> to vector<128x128xbf16>
    %cst_38 = arith.constant dense<0.000000e+00> : vector<16x128xf32>
    %33 = tpu.matmul %30, %32, %cst_38 {dimension_numbers = #tpu.dot_dimension_numbers<[1], [0], [0], [1], [0, 0, 1, 1], [], []>} : vector<16x128xbf16>, vector<128x128xbf16>, vector<16x128xf32> -> vector<16x128xf32>
    %c1_39 = arith.constant 1 : index
    %c0_40 = arith.constant 0 : index
    %34 = vector.load %arg9[%c1_39, %c0_40] : memref<18x128xbf16, #tpu.memory_space<vmem>>, vector<16x128xbf16>
    %c1_41 = arith.constant 1 : index
    %c0_42 = arith.constant 0 : index
    %c0_43 = arith.constant 0 : index
    %35 = vector.load %arg4[%c1_41, %c0_42, %c0_43] : memref<3x128x128xbf16, #tpu.memory_space<vmem>>, vector<1x128x128xbf16>
    %36 = vector.shape_cast %35 : vector<1x128x128xbf16> to vector<128x128xbf16>
    %cst_44 = arith.constant dense<0.000000e+00> : vector<16x128xf32>
    %37 = tpu.matmul %34, %36, %cst_44 {dimension_numbers = #tpu.dot_dimension_numbers<[1], [0], [0], [1], [0, 0, 1, 1], [], []>} : vector<16x128xbf16>, vector<128x128xbf16>, vector<16x128xf32> -> vector<16x128xf32>
    %38 = arith.addf %33, %37 : vector<16x128xf32>
    %c2_45 = arith.constant 2 : index
    %c0_46 = arith.constant 0 : index
    %39 = vector.load %arg9[%c2_45, %c0_46] : memref<18x128xbf16, #tpu.memory_space<vmem>>, vector<16x128xbf16>
    %c2_47 = arith.constant 2 : index
    %c0_48 = arith.constant 0 : index
    %c0_49 = arith.constant 0 : index
    %40 = vector.load %arg4[%c2_47, %c0_48, %c0_49] : memref<3x128x128xbf16, #tpu.memory_space<vmem>>, vector<1x128x128xbf16>
    %41 = vector.shape_cast %40 : vector<1x128x128xbf16> to vector<128x128xbf16>
    %cst_50 = arith.constant dense<0.000000e+00> : vector<16x128xf32>
    %42 = tpu.matmul %39, %41, %cst_50 {dimension_numbers = #tpu.dot_dimension_numbers<[1], [0], [0], [1], [0, 0, 1, 1], [], []>} : vector<16x128xbf16>, vector<128x128xbf16>, vector<16x128xf32> -> vector<16x128xf32>
    %43 = arith.addf %38, %42 : vector<16x128xf32>
    %c0_51 = arith.constant 0 : index
    %c0_52 = arith.constant 0 : index
    %44 = vector.load %arg5[%c0_51, %c0_52] : memref<1x128xf32, #tpu.memory_space<vmem>>, vector<1x128xf32>
    %45 = vector.broadcast %44 : vector<1x128xf32> to vector<16x128xf32>
    %46 = arith.addf %43, %45 : vector<16x128xf32>
    %47 = arith.truncf %46 : vector<16x128xf32> to vector<16x128xbf16>
    %c0_53 = arith.constant 0 : index
    %c0_54 = arith.constant 0 : index
    %c0_55 = arith.constant 0 : index
    %48 = vector.load %arg6[%c0_53, %c0_54, %c0_55] : memref<1x16x128xbf16, #tpu.memory_space<vmem>>, vector<1x16x128xbf16>
    %49 = vector.shape_cast %48 : vector<1x16x128xbf16> to vector<16x128xbf16>
    %50 = vector.shape_cast %47 : vector<16x128xbf16> to vector<1x16x128xbf16>
    tpu.vector_store %arg6[%c0_53, %c0_54, %c0_55], %50 {strides = array<i32>} : memref<1x16x128xbf16, #tpu.memory_space<vmem>>, vector<1x16x128xbf16>,
    %cst_56 = arith.constant dense<0.000000e+00> : vector<128xf32>
    %51 = vector.multi_reduction <add>, %46, %cst_56 [0] : vector<16x128xf32> to vector<128xf32>
    %52 = vector.shape_cast %51 : vector<128xf32> to vector<1x128xf32>
    %c0_57 = arith.constant 0 : index
    %c0_58 = arith.constant 0 : index
    %c0_59 = arith.constant 0 : index
    %53 = vector.load %arg7[%c0_57, %c0_58, %c0_59] : memref<1x1x128xf32, #tpu.memory_space<vmem>>, vector<1x1x128xf32>
    %54 = vector.shape_cast %53 : vector<1x1x128xf32> to vector<1x128xf32>
    %55 = vector.shape_cast %52 : vector<1x128xf32> to vector<1x1x128xf32>
    tpu.vector_store %arg7[%c0_57, %c0_58, %c0_59], %55 {strides = array<i32>} : memref<1x1x128xf32, #tpu.memory_space<vmem>>, vector<1x1x128xf32>,
    return
  }
  func.func @transform_0(%arg0: i32) -> (i32, i32, i32) {
    %c0_i32 = arith.constant 0 : i32
    %c0_i32_0 = arith.constant 0 : i32
    %c0_i32_1 = arith.constant 0 : i32
    return %arg0, %c0_i32, %c0_i32_0 : i32, i32, i32
  }
  func.func @transform_1(%arg0: i32) -> (i32, i32, i32) {
    %c0_i32 = arith.constant 0 : i32
    %c0_i32_0 = arith.constant 0 : i32
    %c0_i32_1 = arith.constant 0 : i32
    %c0_i32_2 = arith.constant 0 : i32
    return %c0_i32, %c0_i32_0, %c0_i32_1 : i32, i32, i32
  }
  func.func @transform_2(%arg0: i32) -> (i32, i32) {
    %c0_i32 = arith.constant 0 : i32
    %c0_i32_0 = arith.constant 0 : i32
    %c0_i32_1 = arith.constant 0 : i32
    return %c0_i32, %c0_i32_0 : i32, i32
  }
  func.func @transform_3(%arg0: i32) -> (i32, i32, i32) {
    %c0_i32 = arith.constant 0 : i32
    %c0_i32_0 = arith.constant 0 : i32
    %c0_i32_1 = arith.constant 0 : i32
    %c0_i32_2 = arith.constant 0 : i32
    return %c0_i32, %c0_i32_0, %c0_i32_1 : i32, i32, i32
  }
  func.func @transform_4(%arg0: i32) -> (i32, i32) {
    %c0_i32 = arith.constant 0 : i32
    %c0_i32_0 = arith.constant 0 : i32
    %c0_i32_1 = arith.constant 0 : i32
    return %c0_i32, %c0_i32_0 : i32, i32
  }
  func.func @transform_5(%arg0: i32) -> (i32, i32, i32) {
    %c0_i32 = arith.constant 0 : i32
    %c0_i32_0 = arith.constant 0 : i32
    %c0_i32_1 = arith.constant 0 : i32
    return %arg0, %c0_i32, %c0_i32_0 : i32, i32, i32
  }
  func.func @transform_6(%arg0: i32) -> (i32, i32, i32) {
    %c0_i32 = arith.constant 0 : i32
    %c0_i32_0 = arith.constant 0 : i32
    %c0_i32_1 = arith.constant 0 : i32
    return %arg0, %c0_i32, %c0_i32_0 : i32, i32, i32
  }
}

module attributes {stable_mosaic.version = 11 : i64} {
  func.func @_rcab_fused_kernel(%arg0: i32, %arg1: memref<1x16x128xbf16, #tpu.memory_space<vmem>>, %arg2: memref<1x16x128xbf16, #tpu.memory_space<vmem>>, %arg3: memref<1x1x128xf32, #tpu.memory_space<vmem>>, %arg4: memref<3x128x128xbf16, #tpu.memory_space<vmem>>, %arg5: memref<1x128xf32, #tpu.memory_space<vmem>>, %arg6: memref<3x128x128xbf16, #tpu.memory_space<vmem>>, %arg7: memref<1x128xf32, #tpu.memory_space<vmem>>, %arg8: memref<1x16x128xbf16, #tpu.memory_space<vmem>>, %arg9: memref<1x16x128xbf16, #tpu.memory_space<vmem>>, %arg10: memref<1x1x128xf32, #tpu.memory_space<vmem>>, %arg11: memref<18x128xbf16, #tpu.memory_space<vmem>>, %arg12: memref<18x128xbf16, #tpu.memory_space<vmem>>) attributes {dimension_semantics = [#tpu.dimension_semantics<parallel>], iteration_bounds = array<i64: 2>, scalar_prefetch = 0 : i64, scratch_operands = 2 : i64, tpu.core_type = #tpu.core_type<tc>, window_params = [{transform_indices = @transform_0, window_bounds = array<i64: 1, 16, 128>}, {transform_indices = @transform_1, window_bounds = array<i64: 1, 16, 128>}, {transform_indices = @transform_2, window_bounds = array<i64: 1, 1, 128>}, {pipeline_mode = #tpu.pipeline_mode<synchronous>, transform_indices = @transform_3, window_bounds = array<i64: 3, 128, 128>}, {pipeline_mode = #tpu.pipeline_mode<synchronous>, transform_indices = @transform_4, window_bounds = array<i64: 1, 128>}, {pipeline_mode = #tpu.pipeline_mode<synchronous>, transform_indices = @transform_5, window_bounds = array<i64: 3, 128, 128>}, {pipeline_mode = #tpu.pipeline_mode<synchronous>, transform_indices = @transform_6, window_bounds = array<i64: 1, 128>}, {transform_indices = @transform_7, window_bounds = array<i64: 1, 16, 128>}, {transform_indices = @transform_8, window_bounds = array<i64: 1, 16, 128>}, {transform_indices = @transform_9, window_bounds = array<i64: 1, 1, 128>}]} {
    %c0 = arith.constant 0 : index
    %c0_0 = arith.constant 0 : index
    %c0_1 = arith.constant 0 : index
    %0 = vector.load %arg1[%c0, %c0_0, %c0_1] : memref<1x16x128xbf16, #tpu.memory_space<vmem>>, vector<1x16x128xbf16>
    %1 = vector.shape_cast %0 : vector<1x16x128xbf16> to vector<16x128xbf16>
    %2 = arith.extf %1 : vector<16x128xbf16> to vector<16x128xf32>
    %c0_2 = arith.constant 0 : index
    %c0_3 = arith.constant 0 : index
    %c0_4 = arith.constant 0 : index
    %3 = vector.load %arg2[%c0_2, %c0_3, %c0_4] : memref<1x16x128xbf16, #tpu.memory_space<vmem>>, vector<1x16x128xbf16>
    %4 = vector.shape_cast %3 : vector<1x16x128xbf16> to vector<16x128xbf16>
    %5 = arith.extf %4 : vector<16x128xbf16> to vector<16x128xf32>
    %c0_5 = arith.constant 0 : index
    %c0_6 = arith.constant 0 : index
    %c0_7 = arith.constant 0 : index
    %6 = vector.load %arg3[%c0_5, %c0_6, %c0_7] : memref<1x1x128xf32, #tpu.memory_space<vmem>>, vector<1x1x128xf32>
    %7 = vector.shape_cast %6 : vector<1x1x128xf32> to vector<1x128xf32>
    %8 = vector.broadcast %7 : vector<1x128xf32> to vector<16x128xf32>
    %9 = arith.mulf %5, %8 : vector<16x128xf32>
    %10 = arith.addf %2, %9 : vector<16x128xf32>
    %11 = arith.truncf %10 : vector<16x128xf32> to vector<16x128xbf16>
    %c0_8 = arith.constant 0 : index
    %c0_9 = arith.constant 0 : index
    %c0_10 = arith.constant 0 : index
    %12 = vector.load %arg8[%c0_8, %c0_9, %c0_10] : memref<1x16x128xbf16, #tpu.memory_space<vmem>>, vector<1x16x128xbf16>
    %13 = vector.shape_cast %12 : vector<1x16x128xbf16> to vector<16x128xbf16>
    %14 = vector.shape_cast %11 : vector<16x128xbf16> to vector<1x16x128xbf16>
    tpu.vector_store %arg8[%c0_8, %c0_9, %c0_10], %14 {strides = array<i32>} : memref<1x16x128xbf16, #tpu.memory_space<vmem>>, vector<1x16x128xbf16>,
    %cst = arith.constant 0.000000e+00 : bf16
    %15 = vector.broadcast %cst : bf16 to vector<1x128xbf16>
    %c0_11 = arith.constant 0 : index
    %c0_12 = arith.constant 0 : index
    %16 = vector.load %arg11[%c0_11, %c0_12] : memref<18x128xbf16, #tpu.memory_space<vmem>>, vector<1x128xbf16>
    tpu.vector_store %arg11[%c0_11, %c0_12], %15 {strides = array<i32>} : memref<18x128xbf16, #tpu.memory_space<vmem>>, vector<1x128xbf16>,
    %c17 = arith.constant 17 : index
    %c0_13 = arith.constant 0 : index
    %17 = vector.load %arg11[%c17, %c0_13] : memref<18x128xbf16, #tpu.memory_space<vmem>>, vector<1x128xbf16>
    tpu.vector_store %arg11[%c17, %c0_13], %15 {strides = array<i32>} : memref<18x128xbf16, #tpu.memory_space<vmem>>, vector<1x128xbf16>,
    %c1 = arith.constant 1 : index
    %c0_14 = arith.constant 0 : index
    %18 = vector.load %arg11[%c1, %c0_14] : memref<18x128xbf16, #tpu.memory_space<vmem>>, vector<16x128xbf16>
    tpu.vector_store %arg11[%c1, %c0_14], %11 {strides = array<i32>} : memref<18x128xbf16, #tpu.memory_space<vmem>>, vector<16x128xbf16>,
    %c0_15 = arith.constant 0 : index
    %c0_16 = arith.constant 0 : index
    %19 = vector.load %arg11[%c0_15, %c0_16] : memref<18x128xbf16, #tpu.memory_space<vmem>>, vector<16x128xbf16>
    %c0_17 = arith.constant 0 : index
    %c0_18 = arith.constant 0 : index
    %c0_19 = arith.constant 0 : index
    %20 = vector.load %arg4[%c0_17, %c0_18, %c0_19] : memref<3x128x128xbf16, #tpu.memory_space<vmem>>, vector<1x128x128xbf16>
    %21 = vector.shape_cast %20 : vector<1x128x128xbf16> to vector<128x128xbf16>
    %cst_20 = arith.constant dense<0.000000e+00> : vector<16x128xf32>
    %22 = tpu.matmul %19, %21, %cst_20 {dimension_numbers = #tpu.dot_dimension_numbers<[1], [0], [0], [1], [0, 0, 1, 1], [], []>} : vector<16x128xbf16>, vector<128x128xbf16>, vector<16x128xf32> -> vector<16x128xf32>
    %c1_21 = arith.constant 1 : index
    %c0_22 = arith.constant 0 : index
    %23 = vector.load %arg11[%c1_21, %c0_22] : memref<18x128xbf16, #tpu.memory_space<vmem>>, vector<16x128xbf16>
    %c1_23 = arith.constant 1 : index
    %c0_24 = arith.constant 0 : index
    %c0_25 = arith.constant 0 : index
    %24 = vector.load %arg4[%c1_23, %c0_24, %c0_25] : memref<3x128x128xbf16, #tpu.memory_space<vmem>>, vector<1x128x128xbf16>
    %25 = vector.shape_cast %24 : vector<1x128x128xbf16> to vector<128x128xbf16>
    %cst_26 = arith.constant dense<0.000000e+00> : vector<16x128xf32>
    %26 = tpu.matmul %23, %25, %cst_26 {dimension_numbers = #tpu.dot_dimension_numbers<[1], [0], [0], [1], [0, 0, 1, 1], [], []>} : vector<16x128xbf16>, vector<128x128xbf16>, vector<16x128xf32> -> vector<16x128xf32>
    %27 = arith.addf %22, %26 : vector<16x128xf32>
    %c2 = arith.constant 2 : index
    %c0_27 = arith.constant 0 : index
    %28 = vector.load %arg11[%c2, %c0_27] : memref<18x128xbf16, #tpu.memory_space<vmem>>, vector<16x128xbf16>
    %c2_28 = arith.constant 2 : index
    %c0_29 = arith.constant 0 : index
    %c0_30 = arith.constant 0 : index
    %29 = vector.load %arg4[%c2_28, %c0_29, %c0_30] : memref<3x128x128xbf16, #tpu.memory_space<vmem>>, vector<1x128x128xbf16>
    %30 = vector.shape_cast %29 : vector<1x128x128xbf16> to vector<128x128xbf16>
    %cst_31 = arith.constant dense<0.000000e+00> : vector<16x128xf32>
    %31 = tpu.matmul %28, %30, %cst_31 {dimension_numbers = #tpu.dot_dimension_numbers<[1], [0], [0], [1], [0, 0, 1, 1], [], []>} : vector<16x128xbf16>, vector<128x128xbf16>, vector<16x128xf32> -> vector<16x128xf32>
    %32 = arith.addf %27, %31 : vector<16x128xf32>
    %c0_32 = arith.constant 0 : index
    %c0_33 = arith.constant 0 : index
    %33 = vector.load %arg5[%c0_32, %c0_33] : memref<1x128xf32, #tpu.memory_space<vmem>>, vector<1x128xf32>
    %34 = vector.broadcast %33 : vector<1x128xf32> to vector<16x128xf32>
    %35 = arith.addf %32, %34 : vector<16x128xf32>
    %cst_34 = arith.constant 0.000000e+00 : f32
    %36 = vector.broadcast %cst_34 : f32 to vector<16x128xf32>
    %37 = arith.maximumf %35, %36 : vector<16x128xf32>
    %cst_35 = arith.constant 0.000000e+00 : bf16
    %38 = vector.broadcast %cst_35 : bf16 to vector<1x128xbf16>
    %c0_36 = arith.constant 0 : index
    %c0_37 = arith.constant 0 : index
    %39 = vector.load %arg12[%c0_36, %c0_37] : memref<18x128xbf16, #tpu.memory_space<vmem>>, vector<1x128xbf16>
    tpu.vector_store %arg12[%c0_36, %c0_37], %38 {strides = array<i32>} : memref<18x128xbf16, #tpu.memory_space<vmem>>, vector<1x128xbf16>,
    %c17_38 = arith.constant 17 : index
    %c0_39 = arith.constant 0 : index
    %40 = vector.load %arg12[%c17_38, %c0_39] : memref<18x128xbf16, #tpu.memory_space<vmem>>, vector<1x128xbf16>
    tpu.vector_store %arg12[%c17_38, %c0_39], %38 {strides = array<i32>} : memref<18x128xbf16, #tpu.memory_space<vmem>>, vector<1x128xbf16>,
    %41 = arith.truncf %37 : vector<16x128xf32> to vector<16x128xbf16>
    %c1_40 = arith.constant 1 : index
    %c0_41 = arith.constant 0 : index
    %42 = vector.load %arg12[%c1_40, %c0_41] : memref<18x128xbf16, #tpu.memory_space<vmem>>, vector<16x128xbf16>
    tpu.vector_store %arg12[%c1_40, %c0_41], %41 {strides = array<i32>} : memref<18x128xbf16, #tpu.memory_space<vmem>>, vector<16x128xbf16>,
    %c0_42 = arith.constant 0 : index
    %c0_43 = arith.constant 0 : index
    %43 = vector.load %arg12[%c0_42, %c0_43] : memref<18x128xbf16, #tpu.memory_space<vmem>>, vector<16x128xbf16>
    %c0_44 = arith.constant 0 : index
    %c0_45 = arith.constant 0 : index
    %c0_46 = arith.constant 0 : index
    %44 = vector.load %arg6[%c0_44, %c0_45, %c0_46] : memref<3x128x128xbf16, #tpu.memory_space<vmem>>, vector<1x128x128xbf16>
    %45 = vector.shape_cast %44 : vector<1x128x128xbf16> to vector<128x128xbf16>
    %cst_47 = arith.constant dense<0.000000e+00> : vector<16x128xf32>
    %46 = tpu.matmul %43, %45, %cst_47 {dimension_numbers = #tpu.dot_dimension_numbers<[1], [0], [0], [1], [0, 0, 1, 1], [], []>} : vector<16x128xbf16>, vector<128x128xbf16>, vector<16x128xf32> -> vector<16x128xf32>
    %c1_48 = arith.constant 1 : index
    %c0_49 = arith.constant 0 : index
    %47 = vector.load %arg12[%c1_48, %c0_49] : memref<18x128xbf16, #tpu.memory_space<vmem>>, vector<16x128xbf16>
    %c1_50 = arith.constant 1 : index
    %c0_51 = arith.constant 0 : index
    %c0_52 = arith.constant 0 : index
    %48 = vector.load %arg6[%c1_50, %c0_51, %c0_52] : memref<3x128x128xbf16, #tpu.memory_space<vmem>>, vector<1x128x128xbf16>
    %49 = vector.shape_cast %48 : vector<1x128x128xbf16> to vector<128x128xbf16>
    %cst_53 = arith.constant dense<0.000000e+00> : vector<16x128xf32>
    %50 = tpu.matmul %47, %49, %cst_53 {dimension_numbers = #tpu.dot_dimension_numbers<[1], [0], [0], [1], [0, 0, 1, 1], [], []>} : vector<16x128xbf16>, vector<128x128xbf16>, vector<16x128xf32> -> vector<16x128xf32>
    %51 = arith.addf %46, %50 : vector<16x128xf32>
    %c2_54 = arith.constant 2 : index
    %c0_55 = arith.constant 0 : index
    %52 = vector.load %arg12[%c2_54, %c0_55] : memref<18x128xbf16, #tpu.memory_space<vmem>>, vector<16x128xbf16>
    %c2_56 = arith.constant 2 : index
    %c0_57 = arith.constant 0 : index
    %c0_58 = arith.constant 0 : index
    %53 = vector.load %arg6[%c2_56, %c0_57, %c0_58] : memref<3x128x128xbf16, #tpu.memory_space<vmem>>, vector<1x128x128xbf16>
    %54 = vector.shape_cast %53 : vector<1x128x128xbf16> to vector<128x128xbf16>
    %cst_59 = arith.constant dense<0.000000e+00> : vector<16x128xf32>
    %55 = tpu.matmul %52, %54, %cst_59 {dimension_numbers = #tpu.dot_dimension_numbers<[1], [0], [0], [1], [0, 0, 1, 1], [], []>} : vector<16x128xbf16>, vector<128x128xbf16>, vector<16x128xf32> -> vector<16x128xf32>
    %56 = arith.addf %51, %55 : vector<16x128xf32>
    %c0_60 = arith.constant 0 : index
    %c0_61 = arith.constant 0 : index
    %57 = vector.load %arg7[%c0_60, %c0_61] : memref<1x128xf32, #tpu.memory_space<vmem>>, vector<1x128xf32>
    %58 = vector.broadcast %57 : vector<1x128xf32> to vector<16x128xf32>
    %59 = arith.addf %56, %58 : vector<16x128xf32>
    %60 = arith.truncf %59 : vector<16x128xf32> to vector<16x128xbf16>
    %c0_62 = arith.constant 0 : index
    %c0_63 = arith.constant 0 : index
    %c0_64 = arith.constant 0 : index
    %61 = vector.load %arg9[%c0_62, %c0_63, %c0_64] : memref<1x16x128xbf16, #tpu.memory_space<vmem>>, vector<1x16x128xbf16>
    %62 = vector.shape_cast %61 : vector<1x16x128xbf16> to vector<16x128xbf16>
    %63 = vector.shape_cast %60 : vector<16x128xbf16> to vector<1x16x128xbf16>
    tpu.vector_store %arg9[%c0_62, %c0_63, %c0_64], %63 {strides = array<i32>} : memref<1x16x128xbf16, #tpu.memory_space<vmem>>, vector<1x16x128xbf16>,
    %cst_65 = arith.constant dense<0.000000e+00> : vector<128xf32>
    %64 = vector.multi_reduction <add>, %59, %cst_65 [0] : vector<16x128xf32> to vector<128xf32>
    %65 = vector.shape_cast %64 : vector<128xf32> to vector<1x128xf32>
    %c0_66 = arith.constant 0 : index
    %c0_67 = arith.constant 0 : index
    %c0_68 = arith.constant 0 : index
    %66 = vector.load %arg10[%c0_66, %c0_67, %c0_68] : memref<1x1x128xf32, #tpu.memory_space<vmem>>, vector<1x1x128xf32>
    %67 = vector.shape_cast %66 : vector<1x1x128xf32> to vector<1x128xf32>
    %68 = vector.shape_cast %65 : vector<1x128xf32> to vector<1x1x128xf32>
    tpu.vector_store %arg10[%c0_66, %c0_67, %c0_68], %68 {strides = array<i32>} : memref<1x1x128xf32, #tpu.memory_space<vmem>>, vector<1x1x128xf32>,
    return
  }
  func.func @transform_0(%arg0: i32) -> (i32, i32, i32) {
    %c0_i32 = arith.constant 0 : i32
    %c0_i32_0 = arith.constant 0 : i32
    %c0_i32_1 = arith.constant 0 : i32
    return %arg0, %c0_i32, %c0_i32_0 : i32, i32, i32
  }
  func.func @transform_1(%arg0: i32) -> (i32, i32, i32) {
    %c0_i32 = arith.constant 0 : i32
    %c0_i32_0 = arith.constant 0 : i32
    %c0_i32_1 = arith.constant 0 : i32
    return %arg0, %c0_i32, %c0_i32_0 : i32, i32, i32
  }
  func.func @transform_2(%arg0: i32) -> (i32, i32, i32) {
    %c0_i32 = arith.constant 0 : i32
    %c0_i32_0 = arith.constant 0 : i32
    %c0_i32_1 = arith.constant 0 : i32
    return %arg0, %c0_i32, %c0_i32_0 : i32, i32, i32
  }
  func.func @transform_3(%arg0: i32) -> (i32, i32, i32) {
    %c0_i32 = arith.constant 0 : i32
    %c0_i32_0 = arith.constant 0 : i32
    %c0_i32_1 = arith.constant 0 : i32
    %c0_i32_2 = arith.constant 0 : i32
    return %c0_i32, %c0_i32_0, %c0_i32_1 : i32, i32, i32
  }
  func.func @transform_4(%arg0: i32) -> (i32, i32) {
    %c0_i32 = arith.constant 0 : i32
    %c0_i32_0 = arith.constant 0 : i32
    %c0_i32_1 = arith.constant 0 : i32
    return %c0_i32, %c0_i32_0 : i32, i32
  }
  func.func @transform_5(%arg0: i32) -> (i32, i32, i32) {
    %c0_i32 = arith.constant 0 : i32
    %c0_i32_0 = arith.constant 0 : i32
    %c0_i32_1 = arith.constant 0 : i32
    %c0_i32_2 = arith.constant 0 : i32
    return %c0_i32, %c0_i32_0, %c0_i32_1 : i32, i32, i32
  }
  func.func @transform_6(%arg0: i32) -> (i32, i32) {
    %c0_i32 = arith.constant 0 : i32
    %c0_i32_0 = arith.constant 0 : i32
    %c0_i32_1 = arith.constant 0 : i32
    return %c0_i32, %c0_i32_0 : i32, i32
  }
  func.func @transform_7(%arg0: i32) -> (i32, i32, i32) {
    %c0_i32 = arith.constant 0 : i32
    %c0_i32_0 = arith.constant 0 : i32
    %c0_i32_1 = arith.constant 0 : i32
    return %arg0, %c0_i32, %c0_i32_0 : i32, i32, i32
  }
  func.func @transform_8(%arg0: i32) -> (i32, i32, i32) {
    %c0_i32 = arith.constant 0 : i32
    %c0_i32_0 = arith.constant 0 : i32
    %c0_i32_1 = arith.constant 0 : i32
    return %arg0, %c0_i32, %c0_i32_0 : i32, i32, i32
  }
  func.func @transform_9(%arg0: i32) -> (i32, i32, i32) {
    %c0_i32 = arith.constant 0 : i32
    %c0_i32_0 = arith.constant 0 : i32
    %c0_i32_1 = arith.constant 0 : i32
    return %arg0, %c0_i32, %c0_i32_0 : i32, i32, i32
  }
}

module attributes {stable_mosaic.version = 11 : i64} {
  func.func @_group_conv_kernel(%arg0: i32, %arg1: memref<1x16x128xbf16, #tpu.memory_space<vmem>>, %arg2: memref<1x16x128xbf16, #tpu.memory_space<vmem>>, %arg3: memref<1x1x128xf32, #tpu.memory_space<vmem>>, %arg4: memref<1x16x128xbf16, #tpu.memory_space<vmem>>, %arg5: memref<3x128x128xbf16, #tpu.memory_space<vmem>>, %arg6: memref<1x128xf32, #tpu.memory_space<vmem>>, %arg7: memref<1x16x128xf32, #tpu.memory_space<vmem>>, %arg8: memref<18x128xbf16, #tpu.memory_space<vmem>>) attributes {dimension_semantics = [#tpu.dimension_semantics<parallel>], iteration_bounds = array<i64: 2>, scalar_prefetch = 0 : i64, scratch_operands = 1 : i64, tpu.core_type = #tpu.core_type<tc>, window_params = [{transform_indices = @transform_0, window_bounds = array<i64: 1, 16, 128>}, {transform_indices = @transform_1, window_bounds = array<i64: 1, 16, 128>}, {transform_indices = @transform_2, window_bounds = array<i64: 1, 1, 128>}, {transform_indices = @transform_3, window_bounds = array<i64: 1, 16, 128>}, {pipeline_mode = #tpu.pipeline_mode<synchronous>, transform_indices = @transform_4, window_bounds = array<i64: 3, 128, 128>}, {pipeline_mode = #tpu.pipeline_mode<synchronous>, transform_indices = @transform_5, window_bounds = array<i64: 1, 128>}, {transform_indices = @transform_6, window_bounds = array<i64: 1, 16, 128>}]} {
    %c0 = arith.constant 0 : index
    %c0_0 = arith.constant 0 : index
    %c0_1 = arith.constant 0 : index
    %0 = vector.load %arg1[%c0, %c0_0, %c0_1] : memref<1x16x128xbf16, #tpu.memory_space<vmem>>, vector<1x16x128xbf16>
    %1 = vector.shape_cast %0 : vector<1x16x128xbf16> to vector<16x128xbf16>
    %2 = arith.extf %1 : vector<16x128xbf16> to vector<16x128xf32>
    %c0_2 = arith.constant 0 : index
    %c0_3 = arith.constant 0 : index
    %c0_4 = arith.constant 0 : index
    %3 = vector.load %arg2[%c0_2, %c0_3, %c0_4] : memref<1x16x128xbf16, #tpu.memory_space<vmem>>, vector<1x16x128xbf16>
    %4 = vector.shape_cast %3 : vector<1x16x128xbf16> to vector<16x128xbf16>
    %5 = arith.extf %4 : vector<16x128xbf16> to vector<16x128xf32>
    %c0_5 = arith.constant 0 : index
    %c0_6 = arith.constant 0 : index
    %c0_7 = arith.constant 0 : index
    %6 = vector.load %arg3[%c0_5, %c0_6, %c0_7] : memref<1x1x128xf32, #tpu.memory_space<vmem>>, vector<1x1x128xf32>
    %7 = vector.shape_cast %6 : vector<1x1x128xf32> to vector<1x128xf32>
    %8 = vector.broadcast %7 : vector<1x128xf32> to vector<16x128xf32>
    %9 = arith.mulf %5, %8 : vector<16x128xf32>
    %10 = arith.addf %2, %9 : vector<16x128xf32>
    %11 = arith.truncf %10 : vector<16x128xf32> to vector<16x128xbf16>
    %cst = arith.constant 0.000000e+00 : bf16
    %12 = vector.broadcast %cst : bf16 to vector<1x128xbf16>
    %c0_8 = arith.constant 0 : index
    %c0_9 = arith.constant 0 : index
    %13 = vector.load %arg8[%c0_8, %c0_9] : memref<18x128xbf16, #tpu.memory_space<vmem>>, vector<1x128xbf16>
    tpu.vector_store %arg8[%c0_8, %c0_9], %12 {strides = array<i32>} : memref<18x128xbf16, #tpu.memory_space<vmem>>, vector<1x128xbf16>,
    %c17 = arith.constant 17 : index
    %c0_10 = arith.constant 0 : index
    %14 = vector.load %arg8[%c17, %c0_10] : memref<18x128xbf16, #tpu.memory_space<vmem>>, vector<1x128xbf16>
    tpu.vector_store %arg8[%c17, %c0_10], %12 {strides = array<i32>} : memref<18x128xbf16, #tpu.memory_space<vmem>>, vector<1x128xbf16>,
    %c1 = arith.constant 1 : index
    %c0_11 = arith.constant 0 : index
    %15 = vector.load %arg8[%c1, %c0_11] : memref<18x128xbf16, #tpu.memory_space<vmem>>, vector<16x128xbf16>
    tpu.vector_store %arg8[%c1, %c0_11], %11 {strides = array<i32>} : memref<18x128xbf16, #tpu.memory_space<vmem>>, vector<16x128xbf16>,
    %c0_12 = arith.constant 0 : index
    %c0_13 = arith.constant 0 : index
    %16 = vector.load %arg8[%c0_12, %c0_13] : memref<18x128xbf16, #tpu.memory_space<vmem>>, vector<16x128xbf16>
    %c0_14 = arith.constant 0 : index
    %c0_15 = arith.constant 0 : index
    %c0_16 = arith.constant 0 : index
    %17 = vector.load %arg5[%c0_14, %c0_15, %c0_16] : memref<3x128x128xbf16, #tpu.memory_space<vmem>>, vector<1x128x128xbf16>
    %18 = vector.shape_cast %17 : vector<1x128x128xbf16> to vector<128x128xbf16>
    %cst_17 = arith.constant dense<0.000000e+00> : vector<16x128xf32>
    %19 = tpu.matmul %16, %18, %cst_17 {dimension_numbers = #tpu.dot_dimension_numbers<[1], [0], [0], [1], [0, 0, 1, 1], [], []>} : vector<16x128xbf16>, vector<128x128xbf16>, vector<16x128xf32> -> vector<16x128xf32>
    %c1_18 = arith.constant 1 : index
    %c0_19 = arith.constant 0 : index
    %20 = vector.load %arg8[%c1_18, %c0_19] : memref<18x128xbf16, #tpu.memory_space<vmem>>, vector<16x128xbf16>
    %c1_20 = arith.constant 1 : index
    %c0_21 = arith.constant 0 : index
    %c0_22 = arith.constant 0 : index
    %21 = vector.load %arg5[%c1_20, %c0_21, %c0_22] : memref<3x128x128xbf16, #tpu.memory_space<vmem>>, vector<1x128x128xbf16>
    %22 = vector.shape_cast %21 : vector<1x128x128xbf16> to vector<128x128xbf16>
    %cst_23 = arith.constant dense<0.000000e+00> : vector<16x128xf32>
    %23 = tpu.matmul %20, %22, %cst_23 {dimension_numbers = #tpu.dot_dimension_numbers<[1], [0], [0], [1], [0, 0, 1, 1], [], []>} : vector<16x128xbf16>, vector<128x128xbf16>, vector<16x128xf32> -> vector<16x128xf32>
    %24 = arith.addf %19, %23 : vector<16x128xf32>
    %c2 = arith.constant 2 : index
    %c0_24 = arith.constant 0 : index
    %25 = vector.load %arg8[%c2, %c0_24] : memref<18x128xbf16, #tpu.memory_space<vmem>>, vector<16x128xbf16>
    %c2_25 = arith.constant 2 : index
    %c0_26 = arith.constant 0 : index
    %c0_27 = arith.constant 0 : index
    %26 = vector.load %arg5[%c2_25, %c0_26, %c0_27] : memref<3x128x128xbf16, #tpu.memory_space<vmem>>, vector<1x128x128xbf16>
    %27 = vector.shape_cast %26 : vector<1x128x128xbf16> to vector<128x128xbf16>
    %cst_28 = arith.constant dense<0.000000e+00> : vector<16x128xf32>
    %28 = tpu.matmul %25, %27, %cst_28 {dimension_numbers = #tpu.dot_dimension_numbers<[1], [0], [0], [1], [0, 0, 1, 1], [], []>} : vector<16x128xbf16>, vector<128x128xbf16>, vector<16x128xf32> -> vector<16x128xf32>
    %29 = arith.addf %24, %28 : vector<16x128xf32>
    %c0_29 = arith.constant 0 : index
    %c0_30 = arith.constant 0 : index
    %30 = vector.load %arg6[%c0_29, %c0_30] : memref<1x128xf32, #tpu.memory_space<vmem>>, vector<1x128xf32>
    %31 = vector.broadcast %30 : vector<1x128xf32> to vector<16x128xf32>
    %32 = arith.addf %29, %31 : vector<16x128xf32>
    %c0_31 = arith.constant 0 : index
    %c0_32 = arith.constant 0 : index
    %c0_33 = arith.constant 0 : index
    %33 = vector.load %arg4[%c0_31, %c0_32, %c0_33] : memref<1x16x128xbf16, #tpu.memory_space<vmem>>, vector<1x16x128xbf16>
    %34 = vector.shape_cast %33 : vector<1x16x128xbf16> to vector<16x128xbf16>
    %35 = arith.extf %34 : vector<16x128xbf16> to vector<16x128xf32>
    %36 = arith.addf %32, %35 : vector<16x128xf32>
    %c0_34 = arith.constant 0 : index
    %c0_35 = arith.constant 0 : index
    %c0_36 = arith.constant 0 : index
    %37 = vector.load %arg7[%c0_34, %c0_35, %c0_36] : memref<1x16x128xf32, #tpu.memory_space<vmem>>, vector<1x16x128xf32>
    %38 = vector.shape_cast %37 : vector<1x16x128xf32> to vector<16x128xf32>
    %39 = vector.shape_cast %36 : vector<16x128xf32> to vector<1x16x128xf32>
    tpu.vector_store %arg7[%c0_34, %c0_35, %c0_36], %39 {strides = array<i32>} : memref<1x16x128xf32, #tpu.memory_space<vmem>>, vector<1x16x128xf32>,
    return
  }
  func.func @transform_0(%arg0: i32) -> (i32, i32, i32) {
    %c0_i32 = arith.constant 0 : i32
    %c0_i32_0 = arith.constant 0 : i32
    %c0_i32_1 = arith.constant 0 : i32
    return %arg0, %c0_i32, %c0_i32_0 : i32, i32, i32
  }
  func.func @transform_1(%arg0: i32) -> (i32, i32, i32) {
    %c0_i32 = arith.constant 0 : i32
    %c0_i32_0 = arith.constant 0 : i32
    %c0_i32_1 = arith.constant 0 : i32
    return %arg0, %c0_i32, %c0_i32_0 : i32, i32, i32
  }
  func.func @transform_2(%arg0: i32) -> (i32, i32, i32) {
    %c0_i32 = arith.constant 0 : i32
    %c0_i32_0 = arith.constant 0 : i32
    %c0_i32_1 = arith.constant 0 : i32
    return %arg0, %c0_i32, %c0_i32_0 : i32, i32, i32
  }
  func.func @transform_3(%arg0: i32) -> (i32, i32, i32) {
    %c0_i32 = arith.constant 0 : i32
    %c0_i32_0 = arith.constant 0 : i32
    %c0_i32_1 = arith.constant 0 : i32
    return %arg0, %c0_i32, %c0_i32_0 : i32, i32, i32
  }
  func.func @transform_4(%arg0: i32) -> (i32, i32, i32) {
    %c0_i32 = arith.constant 0 : i32
    %c0_i32_0 = arith.constant 0 : i32
    %c0_i32_1 = arith.constant 0 : i32
    %c0_i32_2 = arith.constant 0 : i32
    return %c0_i32, %c0_i32_0, %c0_i32_1 : i32, i32, i32
  }
  func.func @transform_5(%arg0: i32) -> (i32, i32) {
    %c0_i32 = arith.constant 0 : i32
    %c0_i32_0 = arith.constant 0 : i32
    %c0_i32_1 = arith.constant 0 : i32
    return %c0_i32, %c0_i32_0 : i32, i32
  }
  func.func @transform_6(%arg0: i32) -> (i32, i32, i32) {
    %c0_i32 = arith.constant 0 : i32
    %c0_i32_0 = arith.constant 0 : i32
    %c0_i32_1 = arith.constant 0 : i32
    return %arg0, %c0_i32, %c0_i32_0 : i32, i32, i32
  }
}

</mosaic_0001>

<bundles_post_ra>
// kernel: rg_forward.5
= control target key start
LH: loop header
LB: loop body
LE: loop exit
PB: predicated region body
PF: predicated region fallthrough
CT: control target
= control target key end

     0   :  { %11 = vsyncpa [#allocation4], 0  ;;  %s1290_s0 = inlined_call_operand.vmem [shape: bf16[2,16,128], index: 0, kind: input, shape index: {}]   ;;  %s1291_s1 = inlined_call_operand.vmem [shape: bf16[2,16,128], index: 1, kind: input, shape index: {}]   ;;  %s1292_s2 = inlined_call_operand.vmem [shape: f32[2,1,128], index: 2, kind: input, shape index: {}]   ;;  %s1293_s3 = inlined_call_operand.vmem [shape: bf16[2,16,128], index: 3, kind: input, shape index: {}]   ;;  %s1294_s4 = inlined_call_operand.vmem [shape: bf16[3,128,128], index: 4, kind: input, shape index: {}]   ;;  %s1295_s5 = inlined_call_operand.vmem [shape: f32[1,128], index: 5, kind: input, shape index: {}]   ;;  %s1296_s6 = inlined_call_operand.hbm [shape: f32[2,16,128], index: 6, kind: output, shape index: {}]  }
   0x1   :  { %13 = vsyncpa [#allocation4 + $0x1], 0  ;;  %s1098_s21 = smov 0   ;;  %s1100_s22 = smov 0  }
   0x2   :  { %s1102_s23 = smov 0   ;;  %s1104_s24 = smov 0  }
   0x3 LB: > { %s1119_s25 = sadd.s32 4294967295, %s1059_s24   ;;  %s763_s26 = sadd.s32 4294967294, %s1059_s24   ;;  %s1059_s24 = sphi %s1104_s24, %s1306_s24   ;;  %s1055_s23 = sphi %s1102_s23, %s1305_s23   ;;  %s1051_s22 = sphi %s1100_s22, %s1304_s22   ;;  %s1047_s21 = sphi %s1098_s21, %s1303_s21  }
   0x4   : > { %s1123_s27 = sadd.s32 1, %s1059_s24   ;;  %s172_s28 = sadd.s32 1, %s1055_s23 }
   0x5   : > { %s169_s29 = ssub.s32 %s1059_s24, %s1123_s27  ;;  %p182_p0 = scmp.ne.s32.totalorder %s1055_s23, %s1051_s22 }
   0x6   : > { %p170_p1 = scmp.eq.s32.totalorder %s169_s29, 0  ;;  %p183_p2 = scmp.eq.s32.totalorder %s1119_s25, 1 }
   0x7   : > { %p188_p3 = scmp.ne.s32.totalorder %s1051_s22, %s1047_s21  ;;  %p189_p4 = scmp.eq.s32.totalorder %s763_s26, 1 }
   0x8   : > { %s1134_s30 = scalar_select %p170_p1, %s1055_s23, %s172_s28  }
   0x9   : > { %p1136_p5 = por %p183_p2, %p182_p0  ;;  %p1140_p6 = por %p189_p4, %p188_p3 }
   0xa   : > { %p766_p7 = scmp.ge.s32.totalorder %s1059_s24, 1  ;;  %p243_p8 = scmp.lt.s32.totalorder %s1059_s24, 3 }
   0xc   : > { %p244_p9 = pnand %p766_p7, %p243_p8 }
   0xd   : > { %p286_p10 = scmp.lt.s32.totalorder (!%p244_p9), %s1119_s25, 1  ;;  %s283_s14 = sand.u32 (!%p244_p9), 1, %s1051_s22  }
   0xe   : > { %247 = sbr.rel (%p244_p9) target bundleno = 207 (0xcf), region = 44  ;;  %s767_s17 = sshll.u32 (!%p244_p9), %s283_s14, 4 }
   0xf   : > { %s934_s18 = sshll.u32 (!%p244_p9), %s1119_s25, 4  ;;  %s1017_s15 = scalar_lea.hbm (!%p244_p9), %s1296_s6, 32 }
  0x10   : > { %s664_s26 = scalar_lea.hbm (!%p244_p9), %s1296_s6, %s934_s18 }
  0x11   : > { %s667_s9 = sshll.u32 (!%p244_p9), %s664_s26, 4  ;;  %s668_s9 = int_to_ptr.hbm [resolvable:$true] %s667_s9 }
  0x12   : > { %s1011_s11 = sshra.s32 (!%p244_p9), %s668_s9, 4  ;;  %s1012_s11 = int_to_ptr.hbm [resolvable:$true] %s1011_s11 }
  0x13   : > { %v917_v0 = vld [vmem:[%s1294_s4 + $0x38] sm:$0xff]  ;;  %v916_v3 = vld [vmem:[%s1294_s4 + $0x30] sm:$0xff]  ;;  %s287_s19 = scalar_select %p286_p10, %s1119_s25, 1  ;;  %vm324_vm0 = vsmask.f32 256  ;;  %v915_v6 = vld [vmem:[%s1294_s4 + $0x28] sm:$0xff] }
  0x14   : > { %v933_v1 = vld [vmem:[%s1294_s4 + $0xb8] sm:$0xff]  ;;  %534 = vmatpush.bf16.msra.mxu1 %v917_v0  ;;  %v932_v4 = vld [vmem:[%s1294_s4 + $0xb0] sm:$0xff]  ;;  %v931_v7 = vld [vmem:[%s1294_s4 + $0xa8] sm:$0xff]  ;;  %vm323_vm1 = vcmask 1040384   ;;  %vm329_vm2 = vsmask.f32 7938  ;;  %p1018_p0 = scmp.lt.s32.totalorder %s1012_s11, %s1296_s6 }
  0x15   : > { %v925_v2 = vld [vmem:[%s1294_s4 + $0x78] sm:$0xff]  ;;  %622 = vmatpush.bf16.msra.mxu2 %v933_v1  ;;  %v924_v5 = vld [vmem:[%s1294_s4 + $0x70] sm:$0xff]  ;;  %s1166_s28 = sshll.u32 %s287_s19, 3  ;;  %s298_s10 = scalar_lea.vmem %s1292_s2, %s287_s19  ;;  %v923_v8 = vld [vmem:[%s1294_s4 + $0x68] sm:$0xff]  ;;  %vm334_vm5 = vsmask.f32 4368 }
  0x16   : > { %471 = vmatpush.bf16.msra.mxu0 %v925_v2  ;;  %s290_s13 = scalar_lea.vmem %s1290_s0, %s1166_s28  ;;  %s295_s16 = scalar_lea.vmem %s1291_s1, %s1166_s28  ;;  %v995_v15 = vld [vmem:[%s298_s10] ss:$0 sm:$0xff]  ;;  %vm1189_vm3 = vmand %vm323_vm1, %vm324_vm0  ;;  %v331_v18 = vld [vmem:[#allocation2 + $0x8] sm:$0x1]  ;;  %vm356_vm6 = vcmask 1043456   ;;  %vm569_vm9 = vcmask 1046528  }
  0x17   : > { %v936_v9 = vld [vmem:[%s290_s13] sm:$0xff]   ;;  %vm330_vm4 = vmand %vm323_vm1, %vm329_vm2  ;;  %v913_v28 = vld [vmem:[%s1294_s4 + $0x18] sm:$0xff]  ;;  %vm409_vm10 = vsmask.f32 7424  ;;  %s303_s10 = scalar_lea.vmem %s1293_s3, %s1166_s28  ;;  %s285_s19 = scalar_lea.vmem [#allocation3], %s767_s17 }
  0x18   : > { %535 = vmatpush.bf16.msra.mxu1 %v916_v3  ;;  %v940_v10 = vld [vmem:[%s295_s16] sm:$0xff]   ;;  %v937_v11 = vunpack.c.l.bf16 %v936_v9  ;;  %v938_v12 = vunpack.c.h.bf16 %v936_v9  ;;  %v332_v24 = vsel %vm330_vm4, 0, %v331_v18  ;;  %v929_v29 = vld [vmem:[%s1294_s4 + $0x98] sm:$0xff]  ;;  %v912_v37 = vld [vmem:[%s1294_s4 + $0x10] sm:$0xff]  ;;  %s665_s29 = sshll.u32 %s285_s19, 4  ;;  %s653_s25 = scalar_lea.sflag [#allocation4], %s283_s14  ;;  %s666_s29 = int_to_ptr.vmem [resolvable:$true] %s665_s29 }
  0x19   : > { %623 = vmatpush.bf16.msra.mxu2 %v932_v4  ;;  %v941_v13 = vunpack.c.l.bf16 %v940_v10  ;;  %v942_v14 = vunpack.c.h.bf16 %v940_v10  ;;  %v326_v17 = vld [vmem:[#allocation2] sm:$0x1]  ;;  %333 = vst [vmem:[#allocation2 + $0x8] sm:$0x1] %v332_v24  ;;  %v921_v32 = vld [vmem:[%s1294_s4 + $0x58] sm:$0xff]  ;;  %v928_v38 = vld [vmem:[%s1294_s4 + $0x90] sm:$0xff] }
  0x1a   : > { %472 = vmatpush.bf16.msra.mxu0 %v924_v5  ;;  %v914_v19 = vld [vmem:[%s1294_s4 + $0x20] sm:$0xff]  ;;  %v327_v23 = vsel %vm1189_vm3, 0, %v326_v17  ;;  %v920_v39 = vld [vmem:[%s1294_s4 + $0x50] sm:$0xff]  ;;  %vm335_vm7 = vmor %vm324_vm0, %vm334_vm5  ;;  %s1013_s12 = scalar_lea.hbm %s1012_s11, 16 }
  0x1b   : > { %v930_v20 = vld [vmem:[%s1294_s4 + $0xa0] sm:$0xff]  ;;  %v317_v21 = vmul.f32 %v995_v15, %v941_v13  ;;  %v318_v22 = vmul.f32 %v995_v15, %v942_v14  ;;  %328 = vst [vmem:[#allocation2] sm:$0x1] %v327_v23  ;;  %vm1225_vm8 = vmand %vm356_vm6, %vm329_vm2  ;;  %v911_v49 = vld [vmem:[%s1294_s4 + $0x8] sm:$0xff]  ;;  %p1014_p11 = scmp.ne.s32.totalorder %s1012_s11, %s1013_s12  ;;  %p1019_p1 = scmp.lt.s32.totalorder %s1017_s15, %s1013_s12 }
  0x1c   : > { %536 = vmatpush.bf16.msra.mxu1 %v915_v6  ;;  %v922_v25 = vld [vmem:[%s1294_s4 + $0x60] sm:$0xff]  ;;  %v927_v50 = vld [vmem:[%s1294_s4 + $0x88] sm:$0xff] }
  0x1d   : > { %624 = vmatpush.bf16.msra.mxu2 %v931_v7  ;;  %v319_v26 = vadd.f32 %v937_v11, %v317_v21  ;;  %v320_v27 = vadd.f32 %v938_v12, %v318_v22  ;;  %v919_v54 = vld [vmem:[%s1294_s4 + $0x48] sm:$0xff]  ;;  %v910_v55 = vld [vmem:[%s1294_s4] sm:$0xff]  ;;  %p1015_p12 = pnand %p1014_p11, %p1136_p5  ;;  %p1020_p2 = por %p1019_p1, %p1018_p0 }
  0x1e   : > { %473 = vmatpush.bf16.msra.mxu0 %v923_v8  ;;  %v926_v56 = vld [vmem:[%s1294_s4 + $0x80] sm:$0xff] }
  0x1f   : > { %v321_v30 = vpack.c.bf16 %v319_v26, %v319_v26  ;;  %v322_v31 = vpack.c.bf16 %v320_v27, %v320_v27  ;;  %v918_v57 = vld [vmem:[%s1294_s4 + $0x40] sm:$0xff]  ;;  %p1016_p13 = pneg %p1015_p12 }
  0x20   : > { %537 = vmatpush.bf16.msra.mxu1 %v914_v19  ;;  %v362_v44 = vld [vmem:[#allocation2 + $0x8] sm:$0x1]  ;;  %v948_v14 = vld [vmem:[%s303_s10] sm:$0xff]  }
  0x21   : > { %625 = vmatpush.bf16.msra.mxu2 %v930_v20  ;;  %v337_v33 = vshrl.u32 %v321_v30, 16  ;;  %v340_v34 = vshll.u32 %v321_v30, 16  ;;  %v345_v35 = vshrl.u32 %v322_v31, 16  ;;  %v348_v36 = vshll.u32 %v322_v31, 16  ;;  %v996_v15 = vld [vmem:[%s1295_s5] ss:$0 sm:$0xff]  ;;  %p1021_p3 = pnand %p1020_p2, %p1016_p13 }
  0x22   : > { %474 = vmatpush.bf16.msra.mxu0 %v922_v25  ;;  %v358_v43 = vld [vmem:[#allocation2] sm:$0xf]  ;;  %v949_v18 = vunpack.c.l.bf16 %v948_v14  ;;  %v950_v26 = vunpack.c.h.bf16 %v948_v14 }
  0x23   : > { %v339_v40 = vrot.slane %v337_v33, 7  ;;  %v347_v41 = vrot.slane %v345_v35, 7 }
  0x24   : > { %538 = vmatpush.bf16.msra.mxu1 %v913_v28 }
  0x25   : > { %626 = vmatpush.bf16.msra.mxu2 %v929_v29  ;;  %v342_v45 = vor.u32 %v340_v34, %v339_v40  ;;  %v343_v46 = vrot.slane %v339_v40, 4  ;;  %v350_v47 = vor.u32 %v348_v36, %v347_v41  ;;  %v352_v48 = vrot.slane %v347_v41, 4 }
  0x26   : > { %475 = vmatpush.bf16.msra.mxu0 %v921_v32 }
  0x27   : > { %v351_v51 = vsel %vm335_vm7, %v343_v46, %v350_v47  ;;  %v359_v52 = vsel %vm1225_vm8, %v342_v45, %v358_v43  ;;  %v363_v53 = vsel %vm1189_vm3, %v352_v48, %v362_v44 }
  0x28   : > { %539 = vmatpush.bf16.msra.mxu1 %v912_v37  ;;  %360 = vst [vmem:[#allocation2] sm:$0xf] %v359_v52 }
  0x29   : > { %627 = vmatpush.bf16.msra.mxu2 %v928_v38  ;;  %361 = vst [vmem:[#allocation2 + $0x4] sm:$0xf] %v351_v51 }
  0x2a   : > { %476 = vmatpush.bf16.msra.mxu0 %v920_v39  ;;  %364 = vst [vmem:[#allocation2 + $0x8] sm:$0x1] %v363_v53 }
  0x2c   : > { %540 = vmatpush.bf16.msra.mxu1 %v911_v49 }
  0x2d   : > { %628 = vmatpush.bf16.msra.mxu2 %v927_v50 }
  0x2e   : > { %477 = vmatpush.bf16.msra.mxu0 %v919_v54 }
  0x2f   : > { %v952_v58 = vld [vmem:[#allocation2] sm:$0xe] }
  0x30   : > { %541 = vmatpush.bf16.msra.mxu1 %v910_v55  ;;  %v944_v59 = vld [vmem:[#allocation2] sm:$0xff]  }
  0x31   : > { %629 = vmatpush.bf16.msra.mxu2 %v926_v56  ;;  %v951_v60 = vld [vmem:[#allocation2] sm:$0xf0]  ;;  %v413_v61 = vshll.u32 %v944_v59, 16  ;;  %v383_v62 = vld [vmem:[#allocation2 + $0x8] sm:$0x1]  ;;  %v411_v0 = vshrl.u32 %v944_v59, 16 }
  0x32   : > { %478 = vmatpush.bf16.msra.mxu0 %v918_v57  ;;  %v953_v63 = vor.u32 %v952_v58, %v951_v60  ;;  %v406_v1 = vunpack.c.l.b16 %v383_v62 }
  0x33   : > { %542 = vmatmul.bf16.vlgmr.msra.gmra.mxu1 %v944_v59  ;;  %v415_v2 = vrot.slane %v413_v61, 1 }
  0x34   : > { %v408_v3 = vpack.c.b16 %v406_v1, %v406_v1  ;;  %v570_v4 = vrot.slane %v953_v63, 1 }
  0x35   : > { %v416_v6 = vor.u32 %v415_v2, %v411_v0 }
  0x36   : > { %v571_v5 = vrot.slane %v408_v3, 1  ;;  %v418_v7 = vshll.u32 %v408_v3, 16 }
  0x38   : > { %v572_v8 = vsel %vm569_vm9, %v570_v4, %v571_v5  ;;  %v420_v9 = vrot.slane %v418_v7, 1 }
  0x39   : > { %630 = vmatmul.bf16.vlgmr.msra.gmra.mxu2 %v572_v8 }
  0x3a   : > { %v421_v10 = vsel %vm409_vm10, %v416_v6, %v420_v9 }
  0x3b   : > { %479 = vmatmul.bf16.vlgmr.msra.gmra.mxu0 %v421_v10 }
  0xb0   : > { %v543_v11 = vpop.f32.mrf.mxu1 }
  0xb8   : > { %v480_v12 = vpop.f32.mrf.mxu0  ;;  %v545_v22 = vpop.f32.mrf.mxu1 }
  0xb9   : > { %v544_v13 = vadd.f32 %v543_v11, %v480_v12 }
  0xbc   : > { %v631_v16 = vpop.f32.mrf.mxu2 }
  0xbd   : > { %v636_v17 = vadd.f32 %v631_v16, %v544_v13 }
  0xbf   : > { %v642_v19 = vadd.f32 %v996_v15, %v636_v17 }
  0xc0   : > { %v482_v20 = vpop.f32.mrf.mxu0 }
  0xc1   : > { %v648_v21 = vadd.f32 %v949_v18, %v642_v19  ;;  %v546_v23 = vadd.f32 %v545_v22, %v482_v20 }
  0xc3   : > { %650 = vst [vmem:[%s285_s19] sm:$0xff] %v648_v21 }
  0xc4   : > { %v633_v24 = vpop.f32.mrf.mxu2 }
  0xc5   : > { %v637_v25 = vadd.f32 %v633_v24, %v546_v23 }
  0xc7   : > { %v643_v27 = vadd.f32 %v996_v15, %v637_v25 }
  0xc9   : > { %v649_v28 = vadd.f32 %v950_v26, %v643_v27 }
  0xcb   : > { %651 = vst [vmem:[%s285_s19 + $0x8] sm:$0xff] %v649_v28 }
  0xcc   : > { %1024 = shalt.err (!%p1021_p3)
}
  0xcd   : > { %s1061_s14 = smov 128   ;;  %s1062_s18 = smov 8  }
  0xce   : > { %954 = dma.vmem_to_hbm [thread:$0]  (%p1136_p5), %s666_s29, 256, %s668_s9, %s653_s25, %s1061_s14, %s1061_s14, %s1062_s18  }
  0xcf PF: > { %p960_p4 = scmp.ge.s32.totalorder %s1059_s24, 2  ;;  %s682_s20 = sand.u32 1, %s1047_s21  }
  0xd0   : > { %s683_s28 = scalar_lea.sflag [#allocation4], %s682_s20 }
  0xd1   : > { %p957_p7 = pnand %p960_p4, %p1140_p6 }
  0xd3   : > { %p958_p8 = pneg %p957_p7 }
  0xd5   : > { %1042 = dma.done.wait (%p958_p8), %s683_s28, 256  }
  0xd6   : > { %1044 = vsyncadd (%p958_p8), %s683_s28, 4294967040  ;;  %p16_p9 = scmp.ge.s32.totalorder %s1123_s27, 4   ;;  %s1303_s21 = smov %s1051_s22 }
  0xd7   : > { %s1304_s22 = smov %s1055_s23  ;;  %s1305_s23 = smov %s1134_s30 }
  0xd8   : > { %s1306_s24 = smov %s1123_s27  ;;  %18 = sbr.rel (!%p16_p9) target bundleno = 3 (0x3), region = 90 }
  0xdd   :  { %689 = vsyncpa [#allocation4], 1 }
  0xde   :  { %691 = vsyncpa [#allocation4 + $0x1], 1 }

// kernel: rg_forward.3
= control target key start
LH: loop header
LB: loop body
LE: loop exit
PB: predicated region body
PF: predicated region fallthrough
CT: control target
= control target key end

     0   :  { %12 = vsyncpa [#allocation5], 0  ;;  %s1645_s0 = inlined_call_operand.vmem [shape: bf16[2,16,128], index: 0, kind: input, shape index: {}]   ;;  %s1646_s1 = inlined_call_operand.hbm [shape: bf16[3,128,128], index: 1, kind: input, shape index: {}]   ;;  %s1647_s2 = inlined_call_operand.vmem [shape: f32[1,128], index: 2, kind: input, shape index: {}]   ;;  %s1648_s3 = inlined_call_operand.hbm [shape: bf16[3,128,128], index: 3, kind: input, shape index: {}]   ;;  %s1649_s4 = inlined_call_operand.hbm [shape: f32[1,128], index: 4, kind: input, shape index: {}]   ;;  %s1650_s5 = inlined_call_operand.vmem [shape: bf16[2,16,128], index: 5, kind: output, shape index: {0}]   ;;  %s1651_s6 = inlined_call_operand.vmem [shape: f32[2,1,128], index: 6, kind: output, shape index: {1}]  }
   0x1   :  { %13 = vsyncpa [#allocation7], 0  ;;  %s1537_s21 = smov 0  }
   0x2 LB: > { %s1543_s22 = sadd.s32 4294967295, %s1495_s21   ;;  %p1072_p0 = scmp.ge.s32.totalorder %s1495_s21, 1  ;;  %s1495_s21 = sphi %s1537_s21, %s19_s21  }
   0x3   : > { %p186_p1 = scmp.lt.s32.totalorder %s1495_s21, 3  ;;  %p1370_p2 = scmp.eq.s32.totalorder %s1543_s22, 0 }
   0x4   : > { %s214_s25 = sshll.u32 %s1648_s3, 4  ;;  %s197_s29 = sshll.u32 %s1646_s1, 4  ;;  %s215_s25 = int_to_ptr.hbm [resolvable:$true] %s214_s25  ;;  %s198_s29 = int_to_ptr.hbm [resolvable:$true] %s197_s29 }
   0x5   : > { %p1551_p3 = pnand %p1072_p0, %p186_p1  ;;  %s1497_s30 = smov [#allocation6]  }
   0x6   : > { %s216_s7 = sshll.u32 %s1497_s30, 4  ;;  %s1498_s8 = smov [#allocation4]   ;;  %s217_s7 = int_to_ptr.vmem [resolvable:$true] %s216_s7 }
   0x7   : > { %p1360_p4 = pneg %p1551_p3  ;;  %s199_s9 = sshll.u32 %s1498_s8, 4  ;;  %s200_s9 = int_to_ptr.vmem [resolvable:$true] %s199_s9 }
   0x8   : > { %s229_s12 = sshll.u32 %s1649_s4, 4  ;;  %s1499_s13 = smov 64   ;;  %s230_s12 = int_to_ptr.hbm [resolvable:$true] %s229_s12 }
   0x9   : > { %p1361_p5 = pnand %p1370_p2, %p1360_p4  ;;  %s1500_s14 = smov 4  }
   0xa   : > { %s1501_s15 = smov [#allocation8]   ;;  %252 = sbr.rel (%p1551_p3) target bundleno = 386 (0x182), region = 40 }
   0xb   : > { %1366 = dma.hbm_to_vmem [thread:$0]  (!%p1361_p5), %s215_s25, 3072, %s217_s7, [#allocation7], %s1499_s13, %s1499_s13, %s1500_s14  }
   0xc   : > { %1363 = dma.hbm_to_vmem [thread:$0]  (!%p1361_p5), %s198_s29, 3072, %s200_s9, [#allocation5], %s1499_s13, %s1499_s13, %s1500_s14  }
   0xd   : > { %s231_s16 = sshll.u32 %s1501_s15, 4  ;;  %s232_s16 = int_to_ptr.vmem [resolvable:$true] %s231_s16 }
   0xe   : > { %1369 = dma.hbm_to_vmem [thread:$0]  (!%p1361_p5), %s230_s12, 16, %s232_s16, [#allocation7]  }
   0xf   : > { %1486 = dma.done.wait (%p1370_p2), [#allocation5], 3072  }
  0x10   : > { %1488 = vsyncadd (%p1370_p2), [#allocation5], 4294964224 }
  0x11   : > { %1490 = dma.done.wait (%p1370_p2), [#allocation7], 3088  }
  0x12   : > { %1492 = vsyncadd (%p1370_p2), [#allocation7], 4294964208  ;;  %p296_p6 = scmp.lt.s32.totalorder %s1543_s22, 1  ;;  %v1296_v0 = vld [vmem:[#allocation4 + $0x78] sm:$0xff]  ;;  %v1295_v3 = vld [vmem:[#allocation4 + $0x70] sm:$0xff]  ;;  %vm312_vm1 = vcmask 1040384  }
  0x13   : > { %v1288_v1 = vld [vmem:[#allocation4 + $0x38] sm:$0xff]  ;;  %460 = vmatpush.bf16.msra.mxu0 %v1296_v0  ;;  %v1287_v4 = vld [vmem:[#allocation4 + $0x30] sm:$0xff]  ;;  %vm313_vm0 = vsmask.f32 256  ;;  %vm318_vm2 = vsmask.f32 7938 }
  0x14   : > { %s1662_s22 = smov (!%p296_p6, %s1543_s22), 1  ;;  %v1304_v2 = vld [vmem:[#allocation4 + $0xb8] sm:$0xff]  ;;  %523 = vmatpush.bf16.msra.mxu1 %v1288_v1  ;;  %v1303_v5 = vld [vmem:[#allocation4 + $0xb0] sm:$0xff]  ;;  %v1294_v6 = vld [vmem:[#allocation4 + $0x68] sm:$0xff]  ;;  %vm323_vm5 = vsmask.f32 4368 }
  0x15   : > { %s1279_s17 = sshll.u32 %s1662_s22, 3  ;;  %611 = vmatpush.bf16.msra.mxu2 %v1304_v2  ;;  %v1286_v7 = vld [vmem:[#allocation4 + $0x28] sm:$0xff]  ;;  %vm1586_vm3 = vmand %vm312_vm1, %vm313_vm0  ;;  %v1293_v11 = vld [vmem:[#allocation4 + $0x60] sm:$0xff]  ;;  %vm345_vm7 = vcmask 1043456   ;;  %vm558_vm9 = vcmask 1046528   ;;  %s308_s30 = scalar_lea.vmem %s1651_s6, %s1662_s22 }
  0x16   : > { %s300_s20 = scalar_lea.vmem %s1645_s0, %s1279_s17  ;;  %v1302_v9 = vld [vmem:[#allocation4 + $0xa8] sm:$0xff]  ;;  %vm1591_vm4 = vmand %vm312_vm1, %vm318_vm2  ;;  %v1285_v12 = vld [vmem:[#allocation4 + $0x20] sm:$0xff]  ;;  %vm398_vm10 = vsmask.f32 7424  ;;  %s305_s27 = scalar_lea.vmem %s1650_s5, %s1279_s17 }
  0x17   : > { %461 = vmatpush.bf16.msra.mxu0 %v1295_v3  ;;  %v310_v13 = vld [vmem:[%s300_s20] sm:$0xf]  ;;  %v311_v14 = vld [vmem:[%s300_s20 + $0x4] sm:$0xf]  ;;  %v1301_v16 = vld [vmem:[#allocation4 + $0xa0] sm:$0xff] }
  0x18   : > { %524 = vmatpush.bf16.msra.mxu1 %v1287_v4  ;;  %v315_v15 = vld [vmem:[#allocation2] sm:$0x1]  ;;  %v320_v18 = vld [vmem:[#allocation2 + $0x8] sm:$0x1]  ;;  %v326_v19 = vshrl.u32 %v310_v13, 16  ;;  %v329_v20 = vshll.u32 %v310_v13, 16  ;;  %vm1601_vm6 = vmor %vm313_vm0, %vm323_vm5 }
  0x19   : > { %612 = vmatpush.bf16.msra.mxu2 %v1303_v5  ;;  %v316_v17 = vsel %vm1586_vm3, 0, %v315_v15  ;;  %v334_v21 = vshrl.u32 %v311_v14, 16  ;;  %v321_v22 = vsel %vm1591_vm4, 0, %v320_v18  ;;  %v337_v23 = vshll.u32 %v311_v14, 16  ;;  %v1292_v29 = vld [vmem:[#allocation4 + $0x58] sm:$0xff]  ;;  %vm1608_vm8 = vmand %vm345_vm7, %vm318_vm2  ;;  %v1291_v37 = vld [vmem:[#allocation4 + $0x50] sm:$0xff] }
  0x1a   : > { %317 = vst [vmem:[#allocation2] sm:$0x1] %v316_v17  ;;  %v328_v24 = vrot.slane %v326_v19, 7  ;;  %v1284_v30 = vld [vmem:[#allocation4 + $0x18] sm:$0xff]  ;;  %v1283_v38 = vld [vmem:[#allocation4 + $0x10] sm:$0xff]  ;;  %v1290_v43 = vld [vmem:[#allocation4 + $0x48] sm:$0xff] }
  0x1b   : > { %462 = vmatpush.bf16.msra.mxu0 %v1294_v6  ;;  %322 = vst [vmem:[#allocation2 + $0x8] sm:$0x1] %v321_v22  ;;  %v336_v25 = vrot.slane %v334_v21, 7  ;;  %v1300_v32 = vld [vmem:[#allocation4 + $0x98] sm:$0xff]  ;;  %v1299_v41 = vld [vmem:[#allocation4 + $0x90] sm:$0xff]  ;;  %v1282_v44 = vld [vmem:[#allocation4 + $0x8] sm:$0xff] }
  0x1c   : > { %525 = vmatpush.bf16.msra.mxu1 %v1286_v7  ;;  %v332_v27 = vrot.slane %v328_v24, 4  ;;  %v331_v31 = vor.u32 %v329_v20, %v328_v24  ;;  %v1298_v45 = vld [vmem:[#allocation4 + $0x88] sm:$0xff]  ;;  %v1289_v47 = vld [vmem:[#allocation4 + $0x40] sm:$0xff]  ;;  %v1312_v2 = vld [vmem:[#allocation6 + $0x38] sm:$0xff] }
  0x1d   : > { %613 = vmatpush.bf16.msra.mxu2 %v1302_v9  ;;  %v339_v28 = vor.u32 %v337_v23, %v336_v25  ;;  %v341_v34 = vrot.slane %v336_v25, 4  ;;  %v1281_v48 = vld [vmem:[#allocation4] sm:$0xff]  ;;  %v635_v3 = vld [vmem:[#allocation3] sm:$0x1]  ;;  %v1328_v6 = vld [vmem:[#allocation6 + $0xb8] sm:$0xff] }
  0x1e   : > { %v1297_v51 = vld [vmem:[#allocation4 + $0x80] sm:$0xff]  ;;  %v1311_v4 = vld [vmem:[#allocation6 + $0x30] sm:$0xff]  ;;  %v636_v5 = vsel %vm1586_vm3, 0, %v635_v3  ;;  %v1310_v7 = vld [vmem:[#allocation6 + $0x28] sm:$0xff] }
  0x1f   : > { %463 = vmatpush.bf16.msra.mxu0 %v1293_v11  ;;  %v340_v33 = vsel %vm1601_vm6, %v332_v27, %v339_v28  ;;  %637 = vst [vmem:[#allocation3] sm:$0x1] %v636_v5  ;;  %v1320_v9 = vld [vmem:[#allocation6 + $0x78] sm:$0xff]  ;;  %v1327_v11 = vld [vmem:[#allocation6 + $0xb0] sm:$0xff]  ;;  %v1318_v18 = vld [vmem:[#allocation6 + $0x68] sm:$0xff] }
  0x20   : > { %526 = vmatpush.bf16.msra.mxu1 %v1285_v12  ;;  %350 = vst [vmem:[#allocation2 + $0x4] sm:$0xf] %v340_v33  ;;  %775 = vmatpush.bf16.msra.mxu3 %v1320_v9  ;;  %v1309_v12 = vld [vmem:[#allocation6 + $0x20] sm:$0xff]  ;;  %v1319_v13 = vld [vmem:[#allocation6 + $0x70] sm:$0xff]  ;;  %v638_v14 = vld [vmem:[#allocation3 + $0x8] sm:$0x1] }
  0x21   : > { %614 = vmatpush.bf16.msra.mxu2 %v1301_v16  ;;  %v347_v36 = vld [vmem:[#allocation2] sm:$0xf]  ;;  %v639_v15 = vsel %vm1591_vm4, 0, %v638_v14  ;;  %v1308_v17 = vld [vmem:[#allocation6 + $0x18] sm:$0xff]  ;;  %v1325_v19 = vld [vmem:[#allocation6 + $0xa0] sm:$0xff] }
  0x22   : > { %v348_v39 = vsel %vm1608_vm8, %v331_v31, %v347_v36  ;;  %v351_v40 = vld [vmem:[#allocation2 + $0x8] sm:$0x1]  ;;  %v1326_v16 = vld [vmem:[#allocation6 + $0xa8] sm:$0xff]  ;;  %640 = vst [vmem:[#allocation3 + $0x8] sm:$0x1] %v639_v15  ;;  %v1317_v21 = vld [vmem:[#allocation6 + $0x60] sm:$0xff] }
  0x23   : > { %464 = vmatpush.bf16.msra.mxu0 %v1292_v29  ;;  %349 = vst [vmem:[#allocation2] sm:$0xf] %v348_v39  ;;  %v352_v42 = vsel %vm1586_vm3, %v341_v34, %v351_v40  ;;  %v1307_v20 = vld [vmem:[#allocation6 + $0x10] sm:$0xff]  ;;  %v1324_v22 = vld [vmem:[#allocation6 + $0x98] sm:$0xff]  ;;  %v1306_v23 = vld [vmem:[#allocation6 + $0x8] sm:$0xff] }
  0x24   : > { %527 = vmatpush.bf16.msra.mxu1 %v1284_v30  ;;  %353 = vst [vmem:[#allocation2 + $0x8] sm:$0x1] %v352_v42  ;;  %776 = vmatpush.bf16.msra.mxu3 %v1319_v13  ;;  %v1316_v24 = vld [vmem:[#allocation6 + $0x58] sm:$0xff]  ;;  %v1323_v10 = vld [vmem:[#allocation6 + $0x90] sm:$0xff]  ;;  %v1305_v27 = vld [vmem:[#allocation6] sm:$0xff] }
  0x25   : > { %615 = vmatpush.bf16.msra.mxu2 %v1300_v32  ;;  %v1315_v29 = vld [vmem:[#allocation6 + $0x50] sm:$0xff]  ;;  %v1389_v31 = vld [vmem:[%s1647_s2] ss:$0 sm:$0xff] }
  0x26   : > { %v1322_v33 = vld [vmem:[#allocation6 + $0x88] sm:$0xff] }
  0x27   : > { %465 = vmatpush.bf16.msra.mxu0 %v1291_v37  ;;  %v1342_v46 = vld [vmem:[#allocation2] sm:$0xf0]  ;;  %v1321_v37 = vld [vmem:[#allocation6 + $0x80] sm:$0xff] }
  0x28   : > { %528 = vmatpush.bf16.msra.mxu1 %v1283_v38  ;;  %777 = vmatpush.bf16.msra.mxu3 %v1318_v18  ;;  %v1314_v36 = vld [vmem:[#allocation6 + $0x48] sm:$0xff] }
  0x29   : > { %616 = vmatpush.bf16.msra.mxu2 %v1299_v41  ;;  %v1313_v41 = vld [vmem:[#allocation6 + $0x40] sm:$0xff] }
  0x2a   : > { %v1330_v49 = vld [vmem:[#allocation2] sm:$0xff]  }
  0x2b   : > { %466 = vmatpush.bf16.msra.mxu0 %v1290_v43  ;;  %v1343_v50 = vld [vmem:[#allocation2] sm:$0xe]  ;;  %v372_v52 = vld [vmem:[#allocation2 + $0x8] sm:$0x1]  ;;  %v402_v53 = vshll.u32 %v1330_v49, 16  ;;  %v400_v56 = vshrl.u32 %v1330_v49, 16 }
  0x2c   : > { %529 = vmatpush.bf16.msra.mxu1 %v1282_v44  ;;  %v1344_v54 = vor.u32 %v1343_v50, %v1342_v46  ;;  %v395_v55 = vunpack.c.l.b16 %v372_v52  ;;  %778 = vmatpush.bf16.msra.mxu3 %v1317_v21 }
  0x2d   : > { %617 = vmatpush.bf16.msra.mxu2 %v1298_v45  ;;  %v404_v57 = vrot.slane %v402_v53, 1 }
  0x2e   : > { %v397_v58 = vpack.c.b16 %v395_v55, %v395_v55  ;;  %v559_v59 = vrot.slane %v1344_v54, 1 }
  0x2f   : > { %467 = vmatpush.bf16.msra.mxu0 %v1289_v47  ;;  %v405_v60 = vor.u32 %v404_v57, %v400_v56 }
  0x30   : > { %530 = vmatpush.bf16.msra.mxu1 %v1281_v48  ;;  %v407_v61 = vshll.u32 %v397_v58, 16  ;;  %v560_v62 = vrot.slane %v397_v58, 1  ;;  %779 = vmatpush.bf16.msra.mxu3 %v1316_v24  ;;  %v1390_v24 = vld [vmem:[#allocation8] ss:$0 sm:$0xff] }
  0x31   : > { %618 = vmatpush.bf16.msra.mxu2 %v1297_v51  ;;  %v663_v51 = vld [vmem:[#allocation3] sm:$0xf] }
  0x32   : > { %v409_v63 = vrot.slane %v407_v61, 1  ;;  %v561_v0 = vsel %vm558_vm9, %v559_v59, %v560_v62  ;;  %v667_v59 = vld [vmem:[#allocation3 + $0x8] sm:$0x1] }
  0x33   : > { %531 = vmatmul.bf16.vlgmr.msra.gmra.mxu1 %v1330_v49  ;;  %838 = vmatpush.bf16.msrb.mxu0 %v1312_v2 }
  0x34   : > { %619 = vmatmul.bf16.vlgmr.msra.gmra.mxu2 %v561_v0  ;;  %v410_v1 = vsel %vm398_vm10, %v405_v60, %v409_v63  ;;  %925 = vmatpush.bf16.msrb.mxu1 %v1328_v6 }
  0x35   : > { %468 = vmatmul.bf16.vlgmr.msra.gmra.mxu0 %v410_v1  ;;  %780 = vmatpush.bf16.msra.mxu3 %v1315_v29 }
  0x37   : > { %839 = vmatpush.bf16.msrb.mxu0 %v1311_v4 }
  0x38   : > { %926 = vmatpush.bf16.msrb.mxu1 %v1327_v11 }
  0x39   : > { %781 = vmatpush.bf16.msra.mxu3 %v1314_v36 }
  0x3b   : > { %840 = vmatpush.bf16.msrb.mxu0 %v1310_v7 }
  0x3c   : > { %927 = vmatpush.bf16.msrb.mxu1 %v1326_v16 }
  0x3d   : > { %782 = vmatpush.bf16.msra.mxu3 %v1313_v41 }
  0x3f   : > { %841 = vmatpush.bf16.msrb.mxu0 %v1309_v12 }
  0x40   : > { %928 = vmatpush.bf16.msrb.mxu1 %v1325_v19 }
  0x43   : > { %842 = vmatpush.bf16.msrb.mxu0 %v1308_v17 }
  0x44   : > { %929 = vmatpush.bf16.msrb.mxu1 %v1324_v22 }
  0x47   : > { %843 = vmatpush.bf16.msrb.mxu0 %v1307_v20 }
  0x48   : > { %930 = vmatpush.bf16.msrb.mxu1 %v1323_v10 }
  0x4b   : > { %844 = vmatpush.bf16.msrb.mxu0 %v1306_v23 }
  0x4c   : > { %931 = vmatpush.bf16.msrb.mxu1 %v1322_v33 }
  0x4f   : > { %845 = vmatpush.bf16.msrb.mxu0 %v1305_v27 }
  0x50   : > { %932 = vmatpush.bf16.msrb.mxu1 %v1321_v37 }
  0xb0   : > { %v532_v25 = vpop.f32.mrf.mxu1 }
  0xb2   : > { %v469_v28 = vpop.f32.mrf.mxu0 }
  0xb3   : > { %v533_v30 = vadd.f32 %v532_v25, %v469_v28 }
  0xb7   : > { %v620_v32 = vpop.f32.mrf.mxu2 }
  0xb8   : > { %v625_v34 = vadd.f32 %v620_v32, %v533_v30  ;;  %v534_v40 = vpop.f32.mrf.mxu1 }
  0xba   : > { %v631_v38 = vadd.f32 %v1389_v31, %v625_v34  ;;  %v471_v39 = vpop.f32.mrf.mxu0 }
  0xbb   : > { %v535_v44 = vadd.f32 %v534_v40, %v471_v39 }
  0xbc   : > { %v633_v42 = vmax.f32 %v631_v38, 0.0 }
  0xbe   : > { %v641_v43 = vpack.c.bf16 %v633_v42, %v633_v42 }
  0xbf   : > { %v622_v45 = vpop.f32.mrf.mxu2 }
  0xc0   : > { %v644_v46 = vshrl.u32 %v641_v43, 16  ;;  %v626_v47 = vadd.f32 %v622_v45, %v535_v44  ;;  %v647_v49 = vshll.u32 %v641_v43, 16 }
  0xc2   : > { %v646_v48 = vrot.slane %v644_v46, 7  ;;  %v632_v50 = vadd.f32 %v1389_v31, %v626_v47 }
  0xc4   : > { %v649_v52 = vor.u32 %v647_v49, %v646_v48  ;;  %v634_v53 = vmax.f32 %v632_v50, 0.0  ;;  %v650_v60 = vrot.slane %v646_v48, 4 }
  0xc6   : > { %v664_v54 = vsel %vm1608_vm8, %v649_v52, %v663_v51  ;;  %v642_v55 = vpack.c.bf16 %v634_v53, %v634_v53 }
  0xc7   : > { %665 = vst [vmem:[#allocation3] sm:$0xf] %v664_v54 }
  0xc8   : > { %v652_v56 = vshrl.u32 %v642_v55, 16  ;;  %v655_v58 = vshll.u32 %v642_v55, 16 }
  0xca   : > { %v654_v57 = vrot.slane %v652_v56, 7 }
  0xcc   : > { %v657_v61 = vor.u32 %v655_v58, %v654_v57  ;;  %v659_v62 = vrot.slane %v654_v57, 4 }
  0xce   : > { %v658_v63 = vsel %vm1601_vm6, %v650_v60, %v657_v61  ;;  %v668_v0 = vsel %vm1586_vm3, %v659_v62, %v667_v59  ;;  %v1346_v4 = vld [vmem:[#allocation3] sm:$0xe] }
  0xcf   : > { %666 = vst [vmem:[#allocation3 + $0x4] sm:$0xf] %v658_v63 }
  0xd0   : > { %669 = vst [vmem:[#allocation3 + $0x8] sm:$0x1] %v668_v0 }
  0xd6   : > { %v1334_v1 = vld [vmem:[#allocation3] sm:$0xff]  }
  0xd7   : > { %v1345_v35 = vld [vmem:[#allocation3] sm:$0xf0]  ;;  %v717_v2 = vshll.u32 %v1334_v1, 16  ;;  %846 = vmatmul.bf16.vlgmr.msrb.gmra.mxu0 %v1334_v1  ;;  %v688_v3 = vld [vmem:[#allocation3 + $0x8] sm:$0x1]  ;;  %v715_v11 = vshrl.u32 %v1334_v1, 16 }
  0xd8   : > { %v711_v5 = vunpack.c.l.b16 %v688_v3  ;;  %v1347_v6 = vor.u32 %v1346_v4, %v1345_v35 }
  0xd9   : > { %v719_v7 = vrot.slane %v717_v2, 1 }
  0xda   : > { %v713_v9 = vpack.c.b16 %v711_v5, %v711_v5  ;;  %v873_v12 = vrot.slane %v1347_v6, 1 }
  0xdb   : > { %v720_v8 = vor.u32 %v719_v7, %v715_v11 }
  0xdc   : > { %v874_v13 = vrot.slane %v713_v9, 1  ;;  %v722_v26 = vshll.u32 %v713_v9, 16 }
  0xde   : > { %v875_v14 = vsel %vm558_vm9, %v873_v12, %v874_v13  ;;  %v724_v15 = vrot.slane %v722_v26, 1 }
  0xdf   : > { %933 = vmatmul.bf16.vlgmr.msrb.gmra.mxu1 %v875_v14 }
  0xe0   : > { %v725_v16 = vsel %vm398_vm10, %v720_v8, %v724_v15 }
  0xe1   : > { %783 = vmatmul.bf16.vlgmr.msra.gmra.mxu3 %v725_v16 }
 0x154   : > { %v847_v17 = vpop.f32.mrf.mxu0 }
 0x15c   : > { %v934_v18 = vpop.f32.mrf.mxu1  ;;  %v849_v21 = vpop.f32.mrf.mxu0 }
 0x164   : > { %v784_v19 = vpop.f32.mrf.mxu3  ;;  %v936_v10 = vpop.f32.mrf.mxu1 }
 0x165   : > { %v848_v20 = vadd.f32 %v847_v17, %v784_v19 }
 0x167   : > { %v939_v23 = vadd.f32 %v934_v18, %v848_v20 }
 0x169   : > { %v945_v28 = vadd.f32 %v1390_v24, %v939_v23 }
 0x16c   : > { %v786_v22 = vpop.f32.mrf.mxu3 }
 0x16d   : > { %v850_v25 = vadd.f32 %v849_v21, %v786_v22 }
 0x16f   : > { %v940_v27 = vadd.f32 %v936_v10, %v850_v25 }
 0x171   : > { %v946_v29 = vadd.f32 %v1390_v24, %v940_v27 }
 0x173   : > { %v1340_v30 = vpack.c.bf16 %v946_v29, %v945_v28  ;;  %v951_v31 = vadd.f32 %v946_v29, %v945_v28 }
 0x175   : > { %1341 = vst [vmem:[%s305_s27] sm:$0xff] %v1340_v30   ;;  %v952_v32 = vrot.slane %v951_v31, 4 }
 0x177   : > { %v953_v33 = vadd.f32 %v952_v32, %v951_v31 }
 0x179   : > { %v954_v34 = vrot.slane %v953_v33, 2 }
 0x17b   : > { %v955_v36 = vadd.f32 %v954_v34, %v953_v33 }
 0x17d   : > { %v956_v37 = vrot.slane %v955_v36, 1 }
 0x17f   : > { %v957_v38 = vadd.f32 %v956_v37, %v955_v36 }
 0x181   : > { %958 = vst [vmem:[%s308_s30] sm:$0x1] %v957_v38 }
 0x182 PF: > { %s19_s21 = sadd.s32 1, %s1495_s21  }
 0x183   : > { %p16_p7 = scmp.ge.s32.totalorder %s19_s21, 4  }
 0x185   :  { %18 = sbr.rel (!%p16_p7) target bundleno = 2 (0x2), region = 99 }
 0x18a   :  { %992 = vsyncpa [#allocation5], 1 }
 0x18b   :  { %994 = vsyncpa [#allocation5 + $0x1], 1 }
 0x18c   :  { %995 = vsyncpa [#allocation7], 1 }

// kernel: rg_forward.4
= control target key start
LH: loop header
LB: loop body
LE: loop exit
PB: predicated region body
PF: predicated region fallthrough
CT: control target
= control target key end

     0   :  { %s1614_s30 = smov 0   ;;  %s1849_s0 = inlined_call_operand.vmem [shape: bf16[2,16,128], index: 0, kind: input, shape index: {}]   ;;  %s1850_s1 = inlined_call_operand.vmem [shape: bf16[2,16,128], index: 1, kind: input, shape index: {}, may-alias: {1,8}]   ;;  %s1851_s2 = inlined_call_operand.vmem [shape: f32[2,1,128], index: 2, kind: input, shape index: {}]   ;;  %s1852_s3 = inlined_call_operand.vmem [shape: bf16[3,128,128], index: 3, kind: input, shape index: {}]   ;;  %s1853_s4 = inlined_call_operand.vmem [shape: f32[1,128], index: 4, kind: input, shape index: {}]   ;;  %s1854_s5 = inlined_call_operand.vmem [shape: bf16[3,128,128], index: 5, kind: input, shape index: {}]   ;;  %s1855_s6 = inlined_call_operand.vmem [shape: f32[1,128], index: 6, kind: input, shape index: {}]   ;;  %s1856_s7 = inlined_call_operand.vmem [shape: bf16[2,16,128], index: 7, kind: output, shape index: {0}]   ;;  %s1857_s8 = inlined_call_operand.vmem [shape: bf16[2,16,128], index: 8, kind: output, shape index: {1}, may-alias: {1,8}]   ;;  %s1858_s9 = inlined_call_operand.vmem [shape: f32[2,1,128], index: 9, kind: output, shape index: {2}]  }
   0x1 LB: > { %s1190_s10 = sadd.s32 4294967295, %s1562_s30   ;;  %p1194_p0 = scmp.ge.s32.totalorder %s1562_s30, 1  ;;  %s1562_s30 = sphi %s1614_s30, %s20_s30  }
   0x2   : > { %p310_p1 = scmp.lt.s32.totalorder %s1562_s30, 3 }
   0x4   : > { %p311_p2 = pnand %p1194_p0, %p310_p1 }
   0x5   : > { %p362_p3 = scmp.lt.s32.totalorder (!%p311_p2), %s1190_s10, 1 }
   0x6   : > { %314 = sbr.rel (%p311_p2) target bundleno = 382 (0x17e), region = 48 }
   0xb   : > { %v1472_v0 = vld [vmem:[%s1852_s3 + $0x38] sm:$0xff]  ;;  %v1471_v3 = vld [vmem:[%s1852_s3 + $0x30] sm:$0xff]  ;;  %s1868_s10 = smov (!%p362_p3, %s1190_s10), 1  ;;  %vm410_vm0 = vsmask.f32 256  ;;  %v1470_v6 = vld [vmem:[%s1852_s3 + $0x28] sm:$0xff] }
   0xc   : > { %v1488_v1 = vld [vmem:[%s1852_s3 + $0xb8] sm:$0xff]  ;;  %620 = vmatpush.bf16.msra.mxu1 %v1472_v0  ;;  %v1487_v4 = vld [vmem:[%s1852_s3 + $0xb0] sm:$0xff]  ;;  %s1643_s23 = sshll.u32 %s1868_s10, 3  ;;  %s374_s26 = scalar_lea.vmem %s1851_s2, %s1868_s10  ;;  %v1486_v7 = vld [vmem:[%s1852_s3 + $0xa8] sm:$0xff]  ;;  %vm409_vm1 = vcmask 1040384   ;;  %vm442_vm6 = vcmask 1043456  }
   0xd   : > { %v1480_v2 = vld [vmem:[%s1852_s3 + $0x78] sm:$0xff]  ;;  %708 = vmatpush.bf16.msra.mxu2 %v1488_v1  ;;  %v1479_v5 = vld [vmem:[%s1852_s3 + $0x70] sm:$0xff]  ;;  %s366_s29 = scalar_lea.vmem %s1849_s0, %s1643_s23  ;;  %s371_s13 = scalar_lea.vmem %s1850_s1, %s1643_s23  ;;  %vm415_vm2 = vsmask.f32 7938  ;;  %v1478_v8 = vld [vmem:[%s1852_s3 + $0x68] sm:$0xff]  ;;  %vm655_vm9 = vcmask 1046528  }
   0xe   : > { %557 = vmatpush.bf16.msra.mxu0 %v1480_v2  ;;  %v1514_v9 = vld [vmem:[%s366_s29] sm:$0xff]   ;;  %vm1667_vm3 = vmand %vm409_vm1, %vm410_vm0  ;;  %v417_v19 = vld [vmem:[#allocation2 + $0x8] sm:$0x1]  ;;  %s379_s29 = scalar_lea.vmem %s1856_s7, %s1643_s23  ;;  %vm420_vm5 = vsmask.f32 4368  ;;  %s384_s17 = scalar_lea.vmem %s1857_s8, %s1643_s23 }
   0xf   : > { %v1518_v10 = vld [vmem:[%s371_s13] sm:$0xff]   ;;  %v1515_v11 = vunpack.c.l.bf16 %v1514_v9  ;;  %v1516_v12 = vunpack.c.h.bf16 %v1514_v9  ;;  %vm1672_vm4 = vmand %vm409_vm1, %vm415_vm2  ;;  %v1468_v29 = vld [vmem:[%s1852_s3 + $0x18] sm:$0xff]  ;;  %vm495_vm10 = vsmask.f32 7424  ;;  %s387_s20 = scalar_lea.vmem %s1858_s9, %s1868_s10 }
  0x10   : > { %621 = vmatpush.bf16.msra.mxu1 %v1471_v3  ;;  %v1519_v13 = vunpack.c.l.bf16 %v1518_v10  ;;  %v1520_v14 = vunpack.c.h.bf16 %v1518_v10  ;;  %v1553_v15 = vld [vmem:[%s374_s26] ss:$0 sm:$0xff]  ;;  %v418_v26 = vsel %vm1672_vm4, 0, %v417_v19  ;;  %v1484_v30 = vld [vmem:[%s1852_s3 + $0x98] sm:$0xff]  ;;  %v1467_v39 = vld [vmem:[%s1852_s3 + $0x10] sm:$0xff] }
  0x11   : > { %709 = vmatpush.bf16.msra.mxu2 %v1487_v4  ;;  %v412_v17 = vld [vmem:[#allocation2] sm:$0x1]  ;;  %419 = vst [vmem:[#allocation2 + $0x8] sm:$0x1] %v418_v26  ;;  %v1476_v34 = vld [vmem:[%s1852_s3 + $0x58] sm:$0xff]  ;;  %v1483_v40 = vld [vmem:[%s1852_s3 + $0x90] sm:$0xff] }
  0x12   : > { %558 = vmatpush.bf16.msra.mxu0 %v1479_v5  ;;  %v1469_v20 = vld [vmem:[%s1852_s3 + $0x20] sm:$0xff]  ;;  %v401_v23 = vmul.f32 %v1553_v15, %v1519_v13  ;;  %v402_v24 = vmul.f32 %v1553_v15, %v1520_v14  ;;  %v413_v25 = vsel %vm1667_vm3, 0, %v412_v17  ;;  %v1475_v41 = vld [vmem:[%s1852_s3 + $0x50] sm:$0xff]  ;;  %vm1712_vm7 = vmor %vm410_vm0, %vm420_vm5 }
  0x13   : > { %v1485_v21 = vld [vmem:[%s1852_s3 + $0xa0] sm:$0xff]  ;;  %414 = vst [vmem:[#allocation2] sm:$0x1] %v413_v25  ;;  %vm1718_vm8 = vmand %vm442_vm6, %vm415_vm2  ;;  %v1466_v52 = vld [vmem:[%s1852_s3 + $0x8] sm:$0xff] }
  0x14   : > { %622 = vmatpush.bf16.msra.mxu1 %v1470_v6  ;;  %v1477_v22 = vld [vmem:[%s1852_s3 + $0x60] sm:$0xff]  ;;  %v403_v27 = vadd.f32 %v1515_v11, %v401_v23  ;;  %v404_v28 = vadd.f32 %v1516_v12, %v402_v24  ;;  %v1482_v53 = vld [vmem:[%s1852_s3 + $0x88] sm:$0xff]  ;;  %v1496_v14 = vld [vmem:[%s1854_s5 + $0x38] sm:$0xff] }
  0x15   : > { %710 = vmatpush.bf16.msra.mxu2 %v1486_v7  ;;  %v1474_v57 = vld [vmem:[%s1852_s3 + $0x48] sm:$0xff]  ;;  %v1465_v58 = vld [vmem:[%s1852_s3] sm:$0xff]  ;;  %v1495_v15 = vld [vmem:[%s1854_s5 + $0x30] sm:$0xff] }
  0x16   : > { %559 = vmatpush.bf16.msra.mxu0 %v1478_v8  ;;  %v405_v31 = vpack.c.bf16 %v403_v27, %v403_v27  ;;  %v406_v32 = vpack.c.bf16 %v404_v28, %v404_v28  ;;  %v1524_v33 = vpack.c.bf16 %v404_v28, %v403_v27  ;;  %v1481_v59 = vld [vmem:[%s1852_s3 + $0x80] sm:$0xff]  ;;  %v732_v17 = vld [vmem:[#allocation3] sm:$0x1]  ;;  %v1511_v23 = vld [vmem:[%s1854_s5 + $0xb0] sm:$0xff] }
  0x17   : > { %v1473_v60 = vld [vmem:[%s1852_s3 + $0x40] sm:$0xff]  ;;  %v733_v19 = vsel %vm1667_vm3, 0, %v732_v17  ;;  %v735_v25 = vld [vmem:[#allocation3 + $0x8] sm:$0x1]  ;;  %v1510_v28 = vld [vmem:[%s1854_s5 + $0xa8] sm:$0xff] }
  0x18   : > { %623 = vmatpush.bf16.msra.mxu1 %v1469_v20  ;;  %1525 = vst [vmem:[%s379_s29] sm:$0xff] %v1524_v33   ;;  %v423_v35 = vshrl.u32 %v405_v31, 16  ;;  %v426_v36 = vshll.u32 %v405_v31, 16  ;;  %v431_v37 = vshrl.u32 %v406_v32, 16  ;;  %v434_v38 = vshll.u32 %v406_v32, 16  ;;  %v448_v47 = vld [vmem:[#allocation2 + $0x8] sm:$0x1] }
  0x19   : > { %711 = vmatpush.bf16.msra.mxu2 %v1485_v21  ;;  %734 = vst [vmem:[#allocation3] sm:$0x1] %v733_v19  ;;  %v1512_v20 = vld [vmem:[%s1854_s5 + $0xb8] sm:$0xff]  ;;  %v1494_v21 = vld [vmem:[%s1854_s5 + $0x28] sm:$0xff]  ;;  %v1493_v24 = vld [vmem:[%s1854_s5 + $0x20] sm:$0xff]  ;;  %v736_v27 = vsel %vm1672_vm4, 0, %v735_v25 }
  0x1a   : > { %560 = vmatpush.bf16.msra.mxu0 %v1477_v22  ;;  %v425_v43 = vrot.slane %v423_v35, 7  ;;  %v433_v44 = vrot.slane %v431_v37, 7  ;;  %v444_v46 = vld [vmem:[#allocation2] sm:$0xf]  ;;  %v1504_v22 = vld [vmem:[%s1854_s5 + $0x78] sm:$0xff]  ;;  %v1503_v26 = vld [vmem:[%s1854_s5 + $0x70] sm:$0xff] }
  0x1b   : > { %872 = vmatpush.bf16.msra.mxu3 %v1504_v22  ;;  %737 = vst [vmem:[#allocation3 + $0x8] sm:$0x1] %v736_v27  ;;  %v1509_v18 = vld [vmem:[%s1854_s5 + $0xa0] sm:$0xff]  ;;  %v1491_v31 = vld [vmem:[%s1854_s5 + $0x10] sm:$0xff]  ;;  %v1508_v33 = vld [vmem:[%s1854_s5 + $0x98] sm:$0xff] }
  0x1c   : > { %624 = vmatpush.bf16.msra.mxu1 %v1468_v29  ;;  %v428_v48 = vor.u32 %v426_v36, %v425_v43  ;;  %v429_v49 = vrot.slane %v425_v43, 4  ;;  %v436_v50 = vor.u32 %v434_v38, %v433_v44  ;;  %v438_v51 = vrot.slane %v433_v44, 4  ;;  %v1492_v29 = vld [vmem:[%s1854_s5 + $0x18] sm:$0xff]  ;;  %v1501_v32 = vld [vmem:[%s1854_s5 + $0x60] sm:$0xff]  ;;  %v1507_v36 = vld [vmem:[%s1854_s5 + $0x90] sm:$0xff] }
  0x1d   : > { %712 = vmatpush.bf16.msra.mxu2 %v1484_v30  ;;  %v1502_v30 = vld [vmem:[%s1854_s5 + $0x68] sm:$0xff]  ;;  %v1500_v35 = vld [vmem:[%s1854_s5 + $0x58] sm:$0xff]  ;;  %v1489_v37 = vld [vmem:[%s1854_s5] sm:$0xff] }
  0x1e   : > { %561 = vmatpush.bf16.msra.mxu0 %v1476_v34  ;;  %v437_v54 = vsel %vm1712_vm7, %v429_v49, %v436_v50  ;;  %v445_v55 = vsel %vm1718_vm8, %v428_v48, %v444_v46  ;;  %v449_v56 = vsel %vm1667_vm3, %v438_v51, %v448_v47  ;;  %v1490_v34 = vld [vmem:[%s1854_s5 + $0x8] sm:$0xff]  ;;  %v1499_v38 = vld [vmem:[%s1854_s5 + $0x50] sm:$0xff]  ;;  %v1554_v43 = vld [vmem:[%s1853_s4] ss:$0 sm:$0xff] }
  0x1f   : > { %446 = vst [vmem:[#allocation2] sm:$0xf] %v445_v55  ;;  %873 = vmatpush.bf16.msra.mxu3 %v1503_v26  ;;  %v1506_v44 = vld [vmem:[%s1854_s5 + $0x88] sm:$0xff]  ;;  %v1505_v49 = vld [vmem:[%s1854_s5 + $0x80] sm:$0xff] }
  0x20   : > { %625 = vmatpush.bf16.msra.mxu1 %v1467_v39  ;;  %447 = vst [vmem:[#allocation2 + $0x4] sm:$0xf] %v437_v54  ;;  %v1498_v48 = vld [vmem:[%s1854_s5 + $0x48] sm:$0xff]  ;;  %v1497_v51 = vld [vmem:[%s1854_s5 + $0x40] sm:$0xff] }
  0x21   : > { %713 = vmatpush.bf16.msra.mxu2 %v1483_v40  ;;  %450 = vst [vmem:[#allocation2 + $0x8] sm:$0x1] %v449_v56 }
  0x22   : > { %562 = vmatpush.bf16.msra.mxu0 %v1475_v41 }
  0x23   : > { %874 = vmatpush.bf16.msra.mxu3 %v1502_v30 }
  0x24   : > { %626 = vmatpush.bf16.msra.mxu1 %v1466_v52 }
  0x25   : > { %714 = vmatpush.bf16.msra.mxu2 %v1482_v53 }
  0x26   : > { %563 = vmatpush.bf16.msra.mxu0 %v1474_v57  ;;  %v1540_v61 = vld [vmem:[#allocation2] sm:$0xe] }
  0x27   : > { %v1527_v62 = vld [vmem:[#allocation2] sm:$0xff]   ;;  %875 = vmatpush.bf16.msra.mxu3 %v1501_v32 }
  0x28   : > { %627 = vmatpush.bf16.msra.mxu1 %v1465_v58  ;;  %v1539_v63 = vld [vmem:[#allocation2] sm:$0xf0]  ;;  %v499_v0 = vshll.u32 %v1527_v62, 16  ;;  %v469_v1 = vld [vmem:[#allocation2 + $0x8] sm:$0x1]  ;;  %v497_v3 = vshrl.u32 %v1527_v62, 16 }
  0x29   : > { %715 = vmatpush.bf16.msra.mxu2 %v1481_v59  ;;  %v1541_v2 = vor.u32 %v1540_v61, %v1539_v63  ;;  %v492_v4 = vunpack.c.l.b16 %v469_v1  ;;  %v760_v63 = vld [vmem:[#allocation3] sm:$0xf] }
  0x2a   : > { %564 = vmatpush.bf16.msra.mxu0 %v1473_v60  ;;  %v501_v5 = vrot.slane %v499_v0, 1 }
  0x2b   : > { %628 = vmatmul.bf16.vlgmr.msra.gmra.mxu1 %v1527_v62  ;;  %v494_v6 = vpack.c.b16 %v492_v4, %v492_v4  ;;  %v656_v7 = vrot.slane %v1541_v2, 1  ;;  %876 = vmatpush.bf16.msra.mxu3 %v1500_v35  ;;  %v1555_v35 = vld [vmem:[%s1855_s6] ss:$0 sm:$0xff] }
  0x2c   : > { %v502_v9 = vor.u32 %v501_v5, %v497_v3  ;;  %1022 = vmatpush.bf16.msrb.mxu1 %v1512_v20 }
  0x2d   : > { %v657_v8 = vrot.slane %v494_v6, 1  ;;  %v504_v10 = vshll.u32 %v494_v6, 16 }
  0x2e   : > { %935 = vmatpush.bf16.msrb.mxu0 %v1496_v14 }
  0x2f   : > { %v658_v11 = vsel %vm655_vm9, %v656_v7, %v657_v8  ;;  %v506_v12 = vrot.slane %v504_v10, 1  ;;  %877 = vmatpush.bf16.msra.mxu3 %v1499_v38  ;;  %v764_v7 = vld [vmem:[#allocation3 + $0x8] sm:$0x1] }
  0x30   : > { %716 = vmatmul.bf16.vlgmr.msra.gmra.mxu2 %v658_v11  ;;  %1023 = vmatpush.bf16.msrb.mxu1 %v1511_v23 }
  0x31   : > { %v507_v13 = vsel %vm495_vm10, %v502_v9, %v506_v12 }
  0x32   : > { %565 = vmatmul.bf16.vlgmr.msra.gmra.mxu0 %v507_v13 }
  0x33   : > { %936 = vmatpush.bf16.msrb.mxu0 %v1495_v15  ;;  %878 = vmatpush.bf16.msra.mxu3 %v1498_v48 }
  0x34   : > { %1024 = vmatpush.bf16.msrb.mxu1 %v1510_v28 }
  0x37   : > { %937 = vmatpush.bf16.msrb.mxu0 %v1494_v21  ;;  %879 = vmatpush.bf16.msra.mxu3 %v1497_v51 }
  0x38   : > { %1025 = vmatpush.bf16.msrb.mxu1 %v1509_v18 }
  0x3b   : > { %938 = vmatpush.bf16.msrb.mxu0 %v1493_v24 }
  0x3c   : > { %1026 = vmatpush.bf16.msrb.mxu1 %v1508_v33 }
  0x3f   : > { %939 = vmatpush.bf16.msrb.mxu0 %v1492_v29 }
  0x40   : > { %1027 = vmatpush.bf16.msrb.mxu1 %v1507_v36 }
  0x43   : > { %940 = vmatpush.bf16.msrb.mxu0 %v1491_v31 }
  0x44   : > { %1028 = vmatpush.bf16.msrb.mxu1 %v1506_v44 }
  0x47   : > { %941 = vmatpush.bf16.msrb.mxu0 %v1490_v34 }
  0x48   : > { %1029 = vmatpush.bf16.msrb.mxu1 %v1505_v49 }
  0x4b   : > { %942 = vmatpush.bf16.msrb.mxu0 %v1489_v37 }
  0xa8   : > { %v629_v39 = vpop.f32.mrf.mxu1 }
  0xaf   : > { %v566_v40 = vpop.f32.mrf.mxu0 }
  0xb0   : > { %v630_v41 = vadd.f32 %v629_v39, %v566_v40  ;;  %v631_v54 = vpop.f32.mrf.mxu1 }
  0xb3   : > { %v717_v46 = vpop.f32.mrf.mxu2 }
  0xb4   : > { %v722_v47 = vadd.f32 %v717_v46, %v630_v41 }
  0xb6   : > { %v728_v50 = vadd.f32 %v1554_v43, %v722_v47 }
  0xb7   : > { %v568_v52 = vpop.f32.mrf.mxu0 }
  0xb8   : > { %v730_v53 = vmax.f32 %v728_v50, 0.0  ;;  %v632_v56 = vadd.f32 %v631_v54, %v568_v52 }
  0xba   : > { %v738_v55 = vpack.c.bf16 %v730_v53, %v730_v53 }
  0xbb   : > { %v719_v57 = vpop.f32.mrf.mxu2 }
  0xbc   : > { %v741_v58 = vshrl.u32 %v738_v55, 16  ;;  %v723_v59 = vadd.f32 %v719_v57, %v632_v56  ;;  %v744_v61 = vshll.u32 %v738_v55, 16 }
  0xbe   : > { %v743_v60 = vrot.slane %v741_v58, 7  ;;  %v729_v62 = vadd.f32 %v1554_v43, %v723_v59 }
  0xc0   : > { %v746_v0 = vor.u32 %v744_v61, %v743_v60  ;;  %v731_v1 = vmax.f32 %v729_v62, 0.0  ;;  %v747_v8 = vrot.slane %v743_v60, 4 }
  0xc2   : > { %v761_v2 = vsel %vm1718_vm8, %v746_v0, %v760_v63  ;;  %v739_v3 = vpack.c.bf16 %v731_v1, %v731_v1 }
  0xc3   : > { %762 = vst [vmem:[#allocation3] sm:$0xf] %v761_v2 }
  0xc4   : > { %v749_v4 = vshrl.u32 %v739_v3, 16  ;;  %v752_v6 = vshll.u32 %v739_v3, 16 }
  0xc6   : > { %v751_v5 = vrot.slane %v749_v4, 7 }
  0xc8   : > { %v754_v9 = vor.u32 %v752_v6, %v751_v5  ;;  %v756_v10 = vrot.slane %v751_v5, 4 }
  0xca   : > { %v755_v11 = vsel %vm1712_vm7, %v747_v8, %v754_v9  ;;  %v765_v12 = vsel %vm1667_vm3, %v756_v10, %v764_v7  ;;  %v1543_v17 = vld [vmem:[#allocation3] sm:$0xe] }
  0xcb   : > { %763 = vst [vmem:[#allocation3 + $0x4] sm:$0xf] %v755_v11 }
  0xcc   : > { %766 = vst [vmem:[#allocation3 + $0x8] sm:$0x1] %v765_v12 }
  0xd2   : > { %v1531_v13 = vld [vmem:[#allocation3] sm:$0xff]  }
  0xd3   : > { %v1542_v45 = vld [vmem:[#allocation3] sm:$0xf0]  ;;  %v814_v14 = vshll.u32 %v1531_v13, 16  ;;  %943 = vmatmul.bf16.vlgmr.msrb.gmra.mxu0 %v1531_v13  ;;  %v785_v15 = vld [vmem:[#allocation3 + $0x8] sm:$0x1]  ;;  %v812_v23 = vshrl.u32 %v1531_v13, 16 }
  0xd4   : > { %v808_v19 = vunpack.c.l.b16 %v785_v15  ;;  %v1544_v20 = vor.u32 %v1543_v17, %v1542_v45 }
  0xd5   : > { %v816_v21 = vrot.slane %v814_v14, 1 }
  0xd6   : > { %v810_v22 = vpack.c.b16 %v808_v19, %v808_v19  ;;  %v970_v24 = vrot.slane %v1544_v20, 1 }
  0xd7   : > { %v817_v16 = vor.u32 %v816_v21, %v812_v23 }
  0xd8   : > { %v971_v25 = vrot.slane %v810_v22, 1  ;;  %v819_v42 = vshll.u32 %v810_v22, 16 }
  0xda   : > { %v972_v26 = vsel %vm655_vm9, %v970_v24, %v971_v25  ;;  %v821_v27 = vrot.slane %v819_v42, 1 }
  0xdb   : > { %1030 = vmatmul.bf16.vlgmr.msrb.gmra.mxu1 %v972_v26 }
  0xdc   : > { %v822_v28 = vsel %vm495_vm10, %v817_v16, %v821_v27 }
  0xdd   : > { %880 = vmatmul.bf16.vlgmr.msra.gmra.mxu3 %v822_v28 }
 0x150   : > { %v944_v29 = vpop.f32.mrf.mxu0 }
 0x158   : > { %v1031_v30 = vpop.f32.mrf.mxu1  ;;  %v946_v32 = vpop.f32.mrf.mxu0 }
 0x160   : > { %v881_v18 = vpop.f32.mrf.mxu3  ;;  %v1033_v37 = vpop.f32.mrf.mxu1 }
 0x161   : > { %v945_v31 = vadd.f32 %v944_v29, %v881_v18 }
 0x163   : > { %v1036_v34 = vadd.f32 %v1031_v30, %v945_v31 }
 0x165   : > { %v1042_v39 = vadd.f32 %v1555_v35, %v1036_v34 }
 0x168   : > { %v883_v33 = vpop.f32.mrf.mxu3 }
 0x169   : > { %v947_v36 = vadd.f32 %v946_v32, %v883_v33 }
 0x16b   : > { %v1037_v38 = vadd.f32 %v1033_v37, %v947_v36 }
 0x16d   : > { %v1043_v40 = vadd.f32 %v1555_v35, %v1037_v38 }
 0x16f   : > { %v1537_v41 = vpack.c.bf16 %v1043_v40, %v1042_v39  ;;  %v1048_v43 = vadd.f32 %v1043_v40, %v1042_v39 }
 0x171   : > { %1538 = vst [vmem:[%s384_s17] sm:$0xff] %v1537_v41   ;;  %v1049_v44 = vrot.slane %v1048_v43, 4 }
 0x173   : > { %v1050_v46 = vadd.f32 %v1049_v44, %v1048_v43 }
 0x175   : > { %v1051_v47 = vrot.slane %v1050_v46, 2 }
 0x177   : > { %v1052_v48 = vadd.f32 %v1051_v47, %v1050_v46 }
 0x179   : > { %v1053_v49 = vrot.slane %v1052_v48, 1 }
 0x17b   : > { %v1054_v50 = vadd.f32 %v1053_v49, %v1052_v48 }
 0x17d   : > { %1055 = vst [vmem:[%s387_s20] sm:$0x1] %v1054_v50 }
 0x17e PF: > { %s20_s30 = sadd.s32 1, %s1562_s30  }
 0x17f   : > { %p17_p4 = scmp.ge.s32.totalorder %s20_s30, 4  }
 0x181   :  { %19 = sbr.rel (!%p17_p4) target bundleno = 1 (0x1), region = 112 }

</bundles_post_ra>
